<compile_context>
chip_gen: v5e
topology: v5e:2x2
jax: 0.10.0
libtpu: 0.0.40
codegen_flags: <defaults>
</compile_context>

<pallas_src>
import math
import functools

import jax
import jax.numpy as jnp
from jax.experimental import pallas as pl
from jax.experimental.pallas import tpu as pltpu


def _encoder_kernel(src_ref, pe_ref, bias_ref,
                    wqkv_ref, bqkv_ref, wo_ref, bo_ref, wt_ref, bt_ref,
                    gamma_ref, beta_ref,
                    out_ref, *, num_heads, eps):
    f32 = jnp.float32
    bf16 = jnp.bfloat16
    H = num_heads

    # One batch element per grid step.
    x = src_ref[0] + pe_ref[...]                      # [S, D] f32 (pos + time add)
    S, D = x.shape
    dk = D // H

    gamma = gamma_ref[...].astype(f32)                # hoisted param loads/upcasts
    beta = beta_ref[...].astype(f32)

    # --- Fused flat QKV projection: one deep MXU push, no x broadcast ---------
    # Weight packed as [3D, D] rows = (q | k | v), head-major; 1/sqrt(dk) is
    # pre-folded into the q rows and bias in the wrapper.
    xT = x.T.astype(bf16)                             # [D, S] (single 2-D transpose)
    qkvT = jnp.dot(wqkv_ref[...], xT,
                   preferred_element_type=f32) + bqkv_ref[...].astype(f32)   # [3D, S]

    # q/k/v and the per-head split live on leading axes -> free slices/reshapes.
    qT = qkvT[0 * D:1 * D].reshape(H, dk, S)          # [H, dk, S] f32
    kT = qkvT[1 * D:2 * D].reshape(H, dk, S).astype(bf16)
    vT = qkvT[2 * D:3 * D].reshape(H, dk, S).astype(bf16)

    # --- Scores: K is already transposed, so this is a fully natural batched
    # matmul (no hidden XLU transpose of K); only q needs one minor-dims
    # transpose.  Additive mask bias hoisted to the wrapper (bf16 in HBM).
    q = jnp.transpose(qT, (0, 2, 1)).astype(bf16)     # [H, S, dk]
    s = jnp.einsum("hqd,hdk->hqk", q, kT,
                   preferred_element_type=f32)        # [H, S, S]
    s = s + bias_ref[0].astype(f32)                   # broadcast over heads

    # Numerically stable softmax; normalization divide on the EUP.
    s = s - jnp.max(s, axis=-1, keepdims=True)
    p = jnp.exp(s)
    p = p * pl.reciprocal(jnp.sum(p, axis=-1, keepdims=True), approx=True)
    p = p.astype(bf16)

    # --- P @ V produced transposed so the head concat is a free leading-dim
    # reshape and the output projection is one deep (K=D), lane-dense (N=D)
    # matmul fused with the head reduction (no [H,S,D] f32 intermediate).
    oT = jnp.einsum("hdk,hqk->hdq", vT, p,
                    preferred_element_type=f32)       # [H, dk, S]
    o = oT.reshape(D, S).T.astype(bf16)               # [S, D] head-major concat
    attn = jnp.dot(o, wo_ref[...],
                   preferred_element_type=f32) + bo_ref[...].astype(f32)     # [S, D]

    # --- LayerNorm over the full [S, D] slab, single-pass statistics ----------
    def layer_norm_2d(y):
        mu = jnp.mean(y)
        var = jnp.mean(y * y) - mu * mu
        return (y - mu) * jax.lax.rsqrt(var + eps) * gamma + beta

    # Residential(x, y) == x + y ; Dropout is identity at inference time.
    x1 = layer_norm_2d(x + attn)

    # --- Transition (Linear d_model -> d_model) + residual + LayerNorm --------
    trans = jnp.dot(x1.astype(bf16), wt_ref[...],
                    preferred_element_type=f32) + bt_ref[...].astype(f32)
    x2 = layer_norm_2d(x1 + trans)

    out_ref[0] = x2


def _vmem_limit_bytes():
    # Per-generation scoped-VMEM budget with headroom for Mosaic scratch:
    # ~96 MiB on v5e/v6e (128 MiB physical), ~48 MiB on v7x (64 MiB physical).
    try:
        cap = int(getattr(pltpu.get_tpu_info(), "vmem_capacity_bytes", 0))
    except Exception:
        cap = 0
    if cap <= 0:
        return 48 << 20       # conservative fallback: fits every generation
    return min((cap * 3) // 4, 100 << 20)


def utransformer_encoder(source, t, source_mask, params, *, num_heads):
    B, S, D = source.shape
    H = num_heads
    dk = D // H
    f32, bf16 = jnp.float32, jnp.bfloat16
    scale = 1.0 / math.sqrt(dk)

    pe = params["pe"]
    # Universal-Transformer style: positional encoding + timestep encoding.
    pe_total = (pe[:S] + pe[t]).astype(f32)                       # [S, D]

    # Fused QKV packed W-as-LHS: rows = (q | k | v) blocks (head-major inside
    # each block); 1/sqrt(dk) folded into the q rows and bias.  All parameters
    # shipped as bf16 (f32 MXU accumulation in-kernel).
    w_qkv = jnp.concatenate([params["wq"].T * scale,
                             params["wk"].T,
                             params["wv"].T], axis=0).astype(bf16)   # [3D, D]
    b_qkv = jnp.concatenate([params["bq"].T * scale,
                             params["bk"].T,
                             params["bv"].T], axis=0).astype(bf16)   # [3D, 1]
    w_o = params["wo"].astype(bf16)                                  # [D, D]
    b_o = params["bo"].astype(bf16)                                  # [1, D]
    w_t = params["wt"].astype(bf16)                                  # [D, D]
    b_t = params["bt"].astype(bf16)                                  # [1, D]
    gamma = params["gamma"].astype(bf16)                             # [S, D]
    beta = params["beta"].astype(bf16)                               # [S, D]

    # Additive attention bias, computed once and shipped as bf16 (halves the
    # per-step [S, S] DMA; robust < 0.5 compare, no per-head select in-kernel).
    attn_bias = jnp.where(source_mask < 0.5, -1e9, 0.0).astype(bf16)   # [B, S, S]

    weights = [w_qkv, b_qkv, w_o, b_o, w_t, b_t, gamma, beta]
    kernel = functools.partial(_encoder_kernel, num_heads=H, eps=1e-5)
    batch3d = lambda b: (b, 0, 0)

    def build(single_buffer_weights):
        def wspec(a):
            n = a.ndim
            imap = lambda b, _n=n: (0,) * _n                # grid-invariant block
            if single_buffer_weights:
                return pl.BlockSpec(a.shape, imap, pipeline_mode=pl.Buffered(1))
            return pl.BlockSpec(a.shape, imap)

        in_specs = [
            pl.BlockSpec((1, S, D), batch3d),               # source
            pl.BlockSpec((S, D), lambda b: (0, 0)),         # combined pos/time embedding
            pl.BlockSpec((1, S, S), batch3d),               # additive mask bias (bf16)
        ] + [wspec(a) for a in weights]

        return pl.pallas_call(
            kernel,
            out_shape=jax.ShapeDtypeStruct((B, S, D), f32),
            grid_spec=pltpu.PrefetchScalarGridSpec(
                num_scalar_prefetch=0,
                grid=(B,),                                   # parallel steps -> megacore
                in_specs=in_specs,
                out_specs=pl.BlockSpec((1, S, D), batch3d),
            ),
            compiler_params=pltpu.CompilerParams(
                dimension_semantics=("parallel",),
                vmem_limit_bytes=_vmem_limit_bytes(),
            ),
        )

    args = (source.astype(f32), pe_total, attn_bias, *weights)
    try:
        # Preferred path: single-buffer the grid-invariant weight blocks.
        return jax.block_until_ready(build(True)(*args))
    except Exception:
        # TODO(synk): this Pallas build rejected pl.Buffered(1) on constant
        # blocks; fall back to default (double-buffered) weight residency.
        return jax.block_until_ready(build(False)(*args))


# ----------------------------- plain-JAX reference -----------------------------
def reference(source, t, source_mask, params, *, num_heads):
    B, S, D = source.shape
    dk = D // num_heads
    hp = jax.lax.Precision.HIGHEST
    pe = params["pe"]
    x = source + (pe[:S] + pe[t])[None, :, :]

    def lin(y, w, b):
        return jnp.dot(y, w, precision=hp) + b

    q = lin(x, params["wq"], params["bq"]).reshape(B, S, num_heads, dk)
    k = lin(x, params["wk"], params["bk"]).reshape(B, S, num_heads, dk)
    v = lin(x, params["wv"], params["bv"]).reshape(B, S, num_heads, dk)
    s = jnp.einsum("bqhd,bkhd->bhqk", q, k, precision=hp) / math.sqrt(dk)
    s = jnp.where(source_mask[:, None, :, :] == 0, -1e9, s)
    p = jax.nn.softmax(s, axis=-1)
    o = jnp.einsum("bhqk,bkhd->bqhd", p, v, precision=hp).reshape(B, S, D)
    attn = lin(o, params["wo"], params["bo"])

    def ln(y):
        mu = jnp.mean(y, axis=(1, 2), keepdims=True)
        var = jnp.mean(jnp.square(y - mu), axis=(1, 2), keepdims=True)
        return (y - mu) * jax.lax.rsqrt(var + 1e-5) * params["gamma"] + params["beta"]

    x1 = ln(x + attn)
    x2 = ln(x1 + lin(x1, params["wt"], params["bt"]))
    return x2


def _sinusoidal_pe(max_len, d_model):
    position = jnp.arange(max_len, dtype=jnp.float32)[:, None]
    div_term = jnp.exp(jnp.arange(0, d_model, 2, dtype=jnp.float32)
                       * (-math.log(10000.0) / d_model))
    pe = jnp.zeros((max_len, d_model), dtype=jnp.float32)
    pe = pe.at[:, 0::2].set(jnp.sin(position * div_term))
    pe = pe.at[:, 1::2].set(jnp.cos(position * div_term))
    return pe


if __name__ == "__main__":
    B, S, D, H = 2, 8, 32, 4
    key = jax.random.PRNGKey(0)
    ks = jax.random.split(key, 16)

    def init_linear(kw, kb, din, dout):
        w = jax.random.normal(kw, (din, dout), jnp.float32) * 0.1
        b = jax.random.normal(kb, (1, dout), jnp.float32) * 0.1
        return w, b

    wq, bq = init_linear(ks[0], ks[1], D, D)
    wk, bk = init_linear(ks[2], ks[3], D, D)
    wv, bv = init_linear(ks[4], ks[5], D, D)
    wo, bo = init_linear(ks[6], ks[7], D, D)
    wt, bt = init_linear(ks[8], ks[9], D, D)
    gamma = 1.0 + 0.05 * jax.random.normal(ks[10], (S, D), jnp.float32)
    beta = 0.05 * jax.random.normal(ks[11], (S, D), jnp.float32)
    pe = _sinusoidal_pe(64, D)

    params = dict(wq=wq, bq=bq, wk=wk, bk=bk, wv=wv, bv=bv, wo=wo, bo=bo,
                  wt=wt, bt=bt, gamma=gamma, beta=beta, pe=pe)

    source = jax.random.normal(ks[12], (B, S, D), jnp.float32)
    t = 3  # Universal-Transformer recurrence step index
    # Causal mask (1 = keep) to exercise the masking path.
    source_mask = jnp.broadcast_to(
        jnp.tril(jnp.ones((S, S), jnp.float32)), (B, S, S))

    out = utransformer_encoder(source, t, source_mask, params, num_heads=H)
    out = jax.block_until_ready(out)

    ref = reference(source, t, source_mask, params, num_heads=H)
    # Kernel uses bf16 MXU operands AND bf16-resident parameters (gamma/beta
    # included) with f32 accumulation; the reference is f32 at HIGHEST
    # precision, so the tolerance reflects end-to-end bf16 parameter rounding.
    max_err = float(jnp.max(jnp.abs(out - ref)))
    assert max_err < 4e-2, f"mismatch vs reference: max_err={max_err}"
    print("KERNEL_OK")
</pallas_src>

<mosaic_0001>
module attributes {stable_mosaic.version = 11 : i64} {
  func.func @_encoder_kernel(%arg0: i32, %arg1: memref<1x8x32xf32, #tpu.memory_space<vmem>>, %arg2: memref<8x32xf32, #tpu.memory_space<vmem>>, %arg3: memref<1x8x8xbf16, #tpu.memory_space<vmem>>, %arg4: memref<96x32xbf16, #tpu.memory_space<vmem>>, %arg5: memref<96x1xbf16, #tpu.memory_space<vmem>>, %arg6: memref<32x32xbf16, #tpu.memory_space<vmem>>, %arg7: memref<1x32xbf16, #tpu.memory_space<vmem>>, %arg8: memref<32x32xbf16, #tpu.memory_space<vmem>>, %arg9: memref<1x32xbf16, #tpu.memory_space<vmem>>, %arg10: memref<8x32xbf16, #tpu.memory_space<vmem>>, %arg11: memref<8x32xbf16, #tpu.memory_space<vmem>>, %arg12: memref<1x8x32xf32, #tpu.memory_space<vmem>>) attributes {dimension_semantics = [#tpu.dimension_semantics<parallel>], iteration_bounds = array<i64: 2>, scalar_prefetch = 0 : i64, scratch_operands = 0 : i64, tpu.core_type = #tpu.core_type<tc>, window_params = [{transform_indices = @transform_0, window_bounds = array<i64: 1, 8, 32>}, {pipeline_mode = #tpu.pipeline_mode<synchronous>, transform_indices = @transform_1, window_bounds = array<i64: 8, 32>}, {transform_indices = @transform_2, window_bounds = array<i64: 1, 8, 8>}, {pipeline_mode = #tpu.pipeline_mode<synchronous>, transform_indices = @transform_3, window_bounds = array<i64: 96, 32>}, {pipeline_mode = #tpu.pipeline_mode<synchronous>, transform_indices = @transform_4, window_bounds = array<i64: 96, 1>}, {pipeline_mode = #tpu.pipeline_mode<synchronous>, transform_indices = @transform_5, window_bounds = array<i64: 32, 32>}, {pipeline_mode = #tpu.pipeline_mode<synchronous>, transform_indices = @transform_6, window_bounds = array<i64: 1, 32>}, {pipeline_mode = #tpu.pipeline_mode<synchronous>, transform_indices = @transform_7, window_bounds = array<i64: 32, 32>}, {pipeline_mode = #tpu.pipeline_mode<synchronous>, transform_indices = @transform_8, window_bounds = array<i64: 1, 32>}, {pipeline_mode = #tpu.pipeline_mode<synchronous>, transform_indices = @transform_9, window_bounds = array<i64: 8, 32>}, {pipeline_mode = #tpu.pipeline_mode<synchronous>, transform_indices = @transform_10, window_bounds = array<i64: 8, 32>}, {transform_indices = @transform_11, window_bounds = array<i64: 1, 8, 32>}]} {
    %c0 = arith.constant 0 : index
    %c0_0 = arith.constant 0 : index
    %c0_1 = arith.constant 0 : index
    %0 = vector.load %arg1[%c0, %c0_0, %c0_1] : memref<1x8x32xf32, #tpu.memory_space<vmem>>, vector<1x8x32xf32>
    %1 = vector.shape_cast %0 : vector<1x8x32xf32> to vector<8x32xf32>
    %c0_2 = arith.constant 0 : index
    %c0_3 = arith.constant 0 : index
    %2 = vector.load %arg2[%c0_2, %c0_3] : memref<8x32xf32, #tpu.memory_space<vmem>>, vector<8x32xf32>
    %3 = arith.addf %1, %2 : vector<8x32xf32>
    %c0_4 = arith.constant 0 : index
    %c0_5 = arith.constant 0 : index
    %4 = vector.load %arg10[%c0_4, %c0_5] : memref<8x32xbf16, #tpu.memory_space<vmem>>, vector<8x32xbf16>
    %5 = arith.extf %4 : vector<8x32xbf16> to vector<8x32xf32>
    %c0_6 = arith.constant 0 : index
    %c0_7 = arith.constant 0 : index
    %6 = vector.load %arg11[%c0_6, %c0_7] : memref<8x32xbf16, #tpu.memory_space<vmem>>, vector<8x32xbf16>
    %7 = arith.extf %6 : vector<8x32xbf16> to vector<8x32xf32>
    %8 = tpu.transpose %3, [1, 0] : vector<8x32xf32> -> vector<32x8xf32>
    %9 = arith.truncf %8 : vector<32x8xf32> to vector<32x8xbf16>
    %c0_8 = arith.constant 0 : index
    %c0_9 = arith.constant 0 : index
    %10 = vector.load %arg4[%c0_8, %c0_9] : memref<96x32xbf16, #tpu.memory_space<vmem>>, vector<96x32xbf16>
    %cst = arith.constant dense<0.000000e+00> : vector<96x8xf32>
    %11 = tpu.matmul %10, %9, %cst {dimension_numbers = #tpu.dot_dimension_numbers<[1], [0], [0], [1], [0, 0, 1, 1], [], []>} : vector<96x32xbf16>, vector<32x8xbf16>, vector<96x8xf32> -> vector<96x8xf32>
    %c0_10 = arith.constant 0 : index
    %c0_11 = arith.constant 0 : index
    %12 = vector.load %arg5[%c0_10, %c0_11] : memref<96x1xbf16, #tpu.memory_space<vmem>>, vector<96x1xbf16>
    %13 = arith.extf %12 : vector<96x1xbf16> to vector<96x1xf32>
    %14 = vector.broadcast %13 : vector<96x1xf32> to vector<96x8xf32>
    %15 = arith.addf %11, %14 : vector<96x8xf32>
    %16 = vector.extract_strided_slice %15 {offsets = [0, 0], sizes = [32, 8], strides = [1, 1]} : vector<96x8xf32> to vector<32x8xf32>
    %17 = vector.shape_cast %16 : vector<32x8xf32> to vector<4x8x8xf32>
    %18 = vector.extract_strided_slice %15 {offsets = [32, 0], sizes = [32, 8], strides = [1, 1]} : vector<96x8xf32> to vector<32x8xf32>
    %19 = vector.shape_cast %18 : vector<32x8xf32> to vector<4x8x8xf32>
    %20 = arith.truncf %19 : vector<4x8x8xf32> to vector<4x8x8xbf16>
    %21 = vector.extract_strided_slice %15 {offsets = [64, 0], sizes = [32, 8], strides = [1, 1]} : vector<96x8xf32> to vector<32x8xf32>
    %22 = vector.shape_cast %21 : vector<32x8xf32> to vector<4x8x8xf32>
    %23 = arith.truncf %22 : vector<4x8x8xf32> to vector<4x8x8xbf16>
    %24 = tpu.transpose %17, [0, 2, 1] : vector<4x8x8xf32> -> vector<4x8x8xf32>
    %25 = arith.truncf %24 : vector<4x8x8xf32> to vector<4x8x8xbf16>
    "tpu.trace_start"() <{level = 10 : i32, message = "hqd,hdk->hqk"}> : () -> ()
    %cst_12 = arith.constant dense<0.000000e+00> : vector<4x8x8xf32>
    %26 = tpu.matmul %25, %20, %cst_12 {dimension_numbers = #tpu.dot_dimension_numbers<[2], [1], [1], [2], [0, 0, 0, 1, 1, 2], [0], [0]>} : vector<4x8x8xbf16>, vector<4x8x8xbf16>, vector<4x8x8xf32> -> vector<4x8x8xf32>
    "tpu.trace_stop"() : () -> ()
    %c0_13 = arith.constant 0 : index
    %c0_14 = arith.constant 0 : index
    %c0_15 = arith.constant 0 : index
    %27 = vector.load %arg3[%c0_13, %c0_14, %c0_15] : memref<1x8x8xbf16, #tpu.memory_space<vmem>>, vector<1x8x8xbf16>
    %28 = vector.shape_cast %27 : vector<1x8x8xbf16> to vector<8x8xbf16>
    %29 = arith.extf %28 : vector<8x8xbf16> to vector<8x8xf32>
    %30 = vector.shape_cast %29 : vector<8x8xf32> to vector<1x8x8xf32>
    %31 = vector.broadcast %30 : vector<1x8x8xf32> to vector<4x8x8xf32>
    %32 = arith.addf %26, %31 : vector<4x8x8xf32>
    %cst_16 = arith.constant dense<0xFF800000> : vector<4x8xf32>
    %33 = vector.multi_reduction <maximumf>, %32, %cst_16 [2] : vector<4x8x8xf32> to vector<4x8xf32>
    %34 = vector.shape_cast %33 : vector<4x8xf32> to vector<4x8x1xf32>
    %35 = vector.broadcast %34 : vector<4x8x1xf32> to vector<4x8x8xf32>
    %36 = arith.subf %32, %35 : vector<4x8x8xf32>
    %37 = math.exp %36 : vector<4x8x8xf32>
    %cst_17 = arith.constant dense<0.000000e+00> : vector<4x8xf32>
    %38 = vector.multi_reduction <add>, %37, %cst_17 [2] : vector<4x8x8xf32> to vector<4x8xf32>
    %39 = vector.shape_cast %38 : vector<4x8xf32> to vector<4x8x1xf32>
    %40 = tpu.reciprocal %39 {approx = true} : vector<4x8x1xf32> -> vector<4x8x1xf32>
    %41 = vector.broadcast %40 : vector<4x8x1xf32> to vector<4x8x8xf32>
    %42 = arith.mulf %37, %41 : vector<4x8x8xf32>
    %43 = arith.truncf %42 : vector<4x8x8xf32> to vector<4x8x8xbf16>
    "tpu.trace_start"() <{level = 10 : i32, message = "hdk,hqk->hdq"}> : () -> ()
    %cst_18 = arith.constant dense<0.000000e+00> : vector<4x8x8xf32>
    %44 = tpu.matmul %23, %43, %cst_18 {dimension_numbers = #tpu.dot_dimension_numbers<[2], [2], [1], [1], [0, 0, 0, 1, 1, 1], [0], [0]>} : vector<4x8x8xbf16>, vector<4x8x8xbf16>, vector<4x8x8xf32> -> vector<4x8x8xf32>
    "tpu.trace_stop"() : () -> ()
    %45 = vector.shape_cast %44 : vector<4x8x8xf32> to vector<32x8xf32>
    %46 = tpu.transpose %45, [1, 0] : vector<32x8xf32> -> vector<8x32xf32>
    %47 = arith.truncf %46 : vector<8x32xf32> to vector<8x32xbf16>
    %c0_19 = arith.constant 0 : index
    %c0_20 = arith.constant 0 : index
    %48 = vector.load %arg6[%c0_19, %c0_20] : memref<32x32xbf16, #tpu.memory_space<vmem>>, vector<32x32xbf16>
    %cst_21 = arith.constant dense<0.000000e+00> : vector<8x32xf32>
    %49 = tpu.matmul %47, %48, %cst_21 {dimension_numbers = #tpu.dot_dimension_numbers<[1], [0], [0], [1], [0, 0, 1, 1], [], []>} : vector<8x32xbf16>, vector<32x32xbf16>, vector<8x32xf32> -> vector<8x32xf32>
    %c0_22 = arith.constant 0 : index
    %c0_23 = arith.constant 0 : index
    %50 = vector.load %arg7[%c0_22, %c0_23] : memref<1x32xbf16, #tpu.memory_space<vmem>>, vector<1x32xbf16>
    %51 = arith.extf %50 : vector<1x32xbf16> to vector<1x32xf32>
    %52 = vector.broadcast %51 : vector<1x32xf32> to vector<8x32xf32>
    %53 = arith.addf %49, %52 : vector<8x32xf32>
    %54 = arith.addf %3, %53 : vector<8x32xf32>
    %55 = vector.shape_cast %54 : vector<8x32xf32> to vector<1x8x32xf32>
    %cst_24 = arith.constant dense<0.000000e+00> : vector<1xf32>
    %56 = vector.multi_reduction <add>, %55, %cst_24 [1, 2] : vector<1x8x32xf32> to vector<1xf32>
    %57 = vector.shape_cast %56 : vector<1xf32> to vector<1x1x1xf32>
    %58 = vector.extract %57[0, 0, 0] : f32 from vector<1x1x1xf32>
    %cst_25 = arith.constant 2.560000e+02 : f32
    %59 = arith.divf %58, %cst_25 : f32
    %60 = arith.mulf %54, %54 : vector<8x32xf32>
    %61 = vector.shape_cast %60 : vector<8x32xf32> to vector<1x8x32xf32>
    %cst_26 = arith.constant dense<0.000000e+00> : vector<1xf32>
    %62 = vector.multi_reduction <add>, %61, %cst_26 [1, 2] : vector<1x8x32xf32> to vector<1xf32>
    %63 = vector.shape_cast %62 : vector<1xf32> to vector<1x1x1xf32>
    %64 = vector.extract %63[0, 0, 0] : f32 from vector<1x1x1xf32>
    %cst_27 = arith.constant 2.560000e+02 : f32
    %65 = arith.divf %64, %cst_27 : f32
    %66 = arith.mulf %59, %59 : f32
    %67 = arith.subf %65, %66 : f32
    %68 = vector.broadcast %59 : f32 to vector<8x32xf32>
    %69 = arith.subf %54, %68 : vector<8x32xf32>
    %cst_28 = arith.constant 9.99999974E-6 : f32
    %70 = arith.addf %67, %cst_28 : f32
    %71 = math.rsqrt %70 : f32
    %72 = vector.broadcast %71 : f32 to vector<8x32xf32>
    %73 = arith.mulf %69, %72 : vector<8x32xf32>
    %74 = arith.mulf %73, %5 : vector<8x32xf32>
    %75 = arith.addf %74, %7 : vector<8x32xf32>
    %76 = arith.truncf %75 : vector<8x32xf32> to vector<8x32xbf16>
    %c0_29 = arith.constant 0 : index
    %c0_30 = arith.constant 0 : index
    %77 = vector.load %arg8[%c0_29, %c0_30] : memref<32x32xbf16, #tpu.memory_space<vmem>>, vector<32x32xbf16>
    %cst_31 = arith.constant dense<0.000000e+00> : vector<8x32xf32>
    %78 = tpu.matmul %76, %77, %cst_31 {dimension_numbers = #tpu.dot_dimension_numbers<[1], [0], [0], [1], [0, 0, 1, 1], [], []>} : vector<8x32xbf16>, vector<32x32xbf16>, vector<8x32xf32> -> vector<8x32xf32>
    %c0_32 = arith.constant 0 : index
    %c0_33 = arith.constant 0 : index
    %79 = vector.load %arg9[%c0_32, %c0_33] : memref<1x32xbf16, #tpu.memory_space<vmem>>, vector<1x32xbf16>
    %80 = arith.extf %79 : vector<1x32xbf16> to vector<1x32xf32>
    %81 = vector.broadcast %80 : vector<1x32xf32> to vector<8x32xf32>
    %82 = arith.addf %78, %81 : vector<8x32xf32>
    %83 = arith.addf %75, %82 : vector<8x32xf32>
    %84 = vector.shape_cast %83 : vector<8x32xf32> to vector<1x8x32xf32>
    %cst_34 = arith.constant dense<0.000000e+00> : vector<1xf32>
    %85 = vector.multi_reduction <add>, %84, %cst_34 [1, 2] : vector<1x8x32xf32> to vector<1xf32>
    %86 = vector.shape_cast %85 : vector<1xf32> to vector<1x1x1xf32>
    %87 = vector.extract %86[0, 0, 0] : f32 from vector<1x1x1xf32>
    %cst_35 = arith.constant 2.560000e+02 : f32
    %88 = arith.divf %87, %cst_35 : f32
    %89 = arith.mulf %83, %83 : vector<8x32xf32>
    %90 = vector.shape_cast %89 : vector<8x32xf32> to vector<1x8x32xf32>
    %cst_36 = arith.constant dense<0.000000e+00> : vector<1xf32>
    %91 = vector.multi_reduction <add>, %90, %cst_36 [1, 2] : vector<1x8x32xf32> to vector<1xf32>
    %92 = vector.shape_cast %91 : vector<1xf32> to vector<1x1x1xf32>
    %93 = vector.extract %92[0, 0, 0] : f32 from vector<1x1x1xf32>
    %cst_37 = arith.constant 2.560000e+02 : f32
    %94 = arith.divf %93, %cst_37 : f32
    %95 = arith.mulf %88, %88 : f32
    %96 = arith.subf %94, %95 : f32
    %97 = vector.broadcast %88 : f32 to vector<8x32xf32>
    %98 = arith.subf %83, %97 : vector<8x32xf32>
    %cst_38 = arith.constant 9.99999974E-6 : f32
    %99 = arith.addf %96, %cst_38 : f32
    %100 = math.rsqrt %99 : f32
    %101 = vector.broadcast %100 : f32 to vector<8x32xf32>
    %102 = arith.mulf %98, %101 : vector<8x32xf32>
    %103 = arith.mulf %102, %5 : vector<8x32xf32>
    %104 = arith.addf %103, %7 : vector<8x32xf32>
    %c0_39 = arith.constant 0 : index
    %c0_40 = arith.constant 0 : index
    %c0_41 = arith.constant 0 : index
    %105 = vector.load %arg12[%c0_39, %c0_40, %c0_41] : memref<1x8x32xf32, #tpu.memory_space<vmem>>, vector<1x8x32xf32>
    %106 = vector.shape_cast %105 : vector<1x8x32xf32> to vector<8x32xf32>
    %107 = vector.shape_cast %104 : vector<8x32xf32> to vector<1x8x32xf32>
    tpu.vector_store %arg12[%c0_39, %c0_40, %c0_41], %107 {strides = array<i32>} : memref<1x8x32xf32, #tpu.memory_space<vmem>>, vector<1x8x32xf32>,
    return
  }
  func.func @transform_0(%arg0: i32) -> (i32, i32, i32) {
    %c0_i32 = arith.constant 0 : i32
    %c0_i32_0 = arith.constant 0 : i32
    %c0_i32_1 = arith.constant 0 : i32
    return %arg0, %c0_i32, %c0_i32_0 : i32, i32, i32
  }
  func.func @transform_1(%arg0: i32) -> (i32, i32) {
    %c0_i32 = arith.constant 0 : i32
    %c0_i32_0 = arith.constant 0 : i32
    %c0_i32_1 = arith.constant 0 : i32
    return %c0_i32, %c0_i32_0 : i32, i32
  }
  func.func @transform_2(%arg0: i32) -> (i32, i32, i32) {
    %c0_i32 = arith.constant 0 : i32
    %c0_i32_0 = arith.constant 0 : i32
    %c0_i32_1 = arith.constant 0 : i32
    return %arg0, %c0_i32, %c0_i32_0 : i32, i32, i32
  }
  func.func @transform_3(%arg0: i32) -> (i32, i32) {
    %c0_i32 = arith.constant 0 : i32
    %c0_i32_0 = arith.constant 0 : i32
    %c0_i32_1 = arith.constant 0 : i32
    return %c0_i32, %c0_i32_0 : i32, i32
  }
  func.func @transform_4(%arg0: i32) -> (i32, i32) {
    %c0_i32 = arith.constant 0 : i32
    %c0_i32_0 = arith.constant 0 : i32
    %c0_i32_1 = arith.constant 0 : i32
    return %c0_i32, %c0_i32_0 : i32, i32
  }
  func.func @transform_5(%arg0: i32) -> (i32, i32) {
    %c0_i32 = arith.constant 0 : i32
    %c0_i32_0 = arith.constant 0 : i32
    %c0_i32_1 = arith.constant 0 : i32
    return %c0_i32, %c0_i32_0 : i32, i32
  }
  func.func @transform_6(%arg0: i32) -> (i32, i32) {
    %c0_i32 = arith.constant 0 : i32
    %c0_i32_0 = arith.constant 0 : i32
    %c0_i32_1 = arith.constant 0 : i32
    return %c0_i32, %c0_i32_0 : i32, i32
  }
  func.func @transform_7(%arg0: i32) -> (i32, i32) {
    %c0_i32 = arith.constant 0 : i32
    %c0_i32_0 = arith.constant 0 : i32
    %c0_i32_1 = arith.constant 0 : i32
    return %c0_i32, %c0_i32_0 : i32, i32
  }
  func.func @transform_8(%arg0: i32) -> (i32, i32) {
    %c0_i32 = arith.constant 0 : i32
    %c0_i32_0 = arith.constant 0 : i32
    %c0_i32_1 = arith.constant 0 : i32
    return %c0_i32, %c0_i32_0 : i32, i32
  }
  func.func @transform_9(%arg0: i32) -> (i32, i32) {
    %c0_i32 = arith.constant 0 : i32
    %c0_i32_0 = arith.constant 0 : i32
    %c0_i32_1 = arith.constant 0 : i32
    return %c0_i32, %c0_i32_0 : i32, i32
  }
  func.func @transform_10(%arg0: i32) -> (i32, i32) {
    %c0_i32 = arith.constant 0 : i32
    %c0_i32_0 = arith.constant 0 : i32
    %c0_i32_1 = arith.constant 0 : i32
    return %c0_i32, %c0_i32_0 : i32, i32
  }
  func.func @transform_11(%arg0: i32) -> (i32, i32, i32) {
    %c0_i32 = arith.constant 0 : i32
    %c0_i32_0 = arith.constant 0 : i32
    %c0_i32_1 = arith.constant 0 : i32
    return %arg0, %c0_i32, %c0_i32_0 : i32, i32, i32
  }
}

module attributes {stable_mosaic.version = 11 : i64} {
  func.func @_encoder_kernel(%arg0: i32, %arg1: memref<1x8x32xf32, #tpu.memory_space<vmem>>, %arg2: memref<8x32xf32, #tpu.memory_space<vmem>>, %arg3: memref<1x8x8xbf16, #tpu.memory_space<vmem>>, %arg4: memref<96x32xbf16, #tpu.memory_space<vmem>>, %arg5: memref<96x1xbf16, #tpu.memory_space<vmem>>, %arg6: memref<32x32xbf16, #tpu.memory_space<vmem>>, %arg7: memref<1x32xbf16, #tpu.memory_space<vmem>>, %arg8: memref<32x32xbf16, #tpu.memory_space<vmem>>, %arg9: memref<1x32xbf16, #tpu.memory_space<vmem>>, %arg10: memref<8x32xbf16, #tpu.memory_space<vmem>>, %arg11: memref<8x32xbf16, #tpu.memory_space<vmem>>, %arg12: memref<1x8x32xf32, #tpu.memory_space<vmem>>) attributes {dimension_semantics = [#tpu.dimension_semantics<parallel>], iteration_bounds = array<i64: 2>, scalar_prefetch = 0 : i64, scratch_operands = 0 : i64, tpu.core_type = #tpu.core_type<tc>, window_params = [{transform_indices = @transform_0, window_bounds = array<i64: 1, 8, 32>}, {pipeline_mode = #tpu.pipeline_mode<synchronous>, transform_indices = @transform_1, window_bounds = array<i64: 8, 32>}, {transform_indices = @transform_2, window_bounds = array<i64: 1, 8, 8>}, {pipeline_mode = #tpu.pipeline_mode<synchronous>, transform_indices = @transform_3, window_bounds = array<i64: 96, 32>}, {pipeline_mode = #tpu.pipeline_mode<synchronous>, transform_indices = @transform_4, window_bounds = array<i64: 96, 1>}, {pipeline_mode = #tpu.pipeline_mode<synchronous>, transform_indices = @transform_5, window_bounds = array<i64: 32, 32>}, {pipeline_mode = #tpu.pipeline_mode<synchronous>, transform_indices = @transform_6, window_bounds = array<i64: 1, 32>}, {pipeline_mode = #tpu.pipeline_mode<synchronous>, transform_indices = @transform_7, window_bounds = array<i64: 32, 32>}, {pipeline_mode = #tpu.pipeline_mode<synchronous>, transform_indices = @transform_8, window_bounds = array<i64: 1, 32>}, {pipeline_mode = #tpu.pipeline_mode<synchronous>, transform_indices = @transform_9, window_bounds = array<i64: 8, 32>}, {pipeline_mode = #tpu.pipeline_mode<synchronous>, transform_indices = @transform_10, window_bounds = array<i64: 8, 32>}, {transform_indices = @transform_11, window_bounds = array<i64: 1, 8, 32>}]} {
    %c0 = arith.constant 0 : index
    %c0_0 = arith.constant 0 : index
    %c0_1 = arith.constant 0 : index
    %0 = vector.load %arg1[%c0, %c0_0, %c0_1] : memref<1x8x32xf32, #tpu.memory_space<vmem>>, vector<1x8x32xf32>
    %1 = vector.shape_cast %0 : vector<1x8x32xf32> to vector<8x32xf32>
    %c0_2 = arith.constant 0 : index
    %c0_3 = arith.constant 0 : index
    %2 = vector.load %arg2[%c0_2, %c0_3] : memref<8x32xf32, #tpu.memory_space<vmem>>, vector<8x32xf32>
    %3 = arith.addf %1, %2 : vector<8x32xf32>
    %c0_4 = arith.constant 0 : index
    %c0_5 = arith.constant 0 : index
    %4 = vector.load %arg10[%c0_4, %c0_5] : memref<8x32xbf16, #tpu.memory_space<vmem>>, vector<8x32xbf16>
    %5 = arith.extf %4 : vector<8x32xbf16> to vector<8x32xf32>
    %c0_6 = arith.constant 0 : index
    %c0_7 = arith.constant 0 : index
    %6 = vector.load %arg11[%c0_6, %c0_7] : memref<8x32xbf16, #tpu.memory_space<vmem>>, vector<8x32xbf16>
    %7 = arith.extf %6 : vector<8x32xbf16> to vector<8x32xf32>
    %8 = tpu.transpose %3, [1, 0] : vector<8x32xf32> -> vector<32x8xf32>
    %9 = arith.truncf %8 : vector<32x8xf32> to vector<32x8xbf16>
    %c0_8 = arith.constant 0 : index
    %c0_9 = arith.constant 0 : index
    %10 = vector.load %arg4[%c0_8, %c0_9] : memref<96x32xbf16, #tpu.memory_space<vmem>>, vector<96x32xbf16>
    %cst = arith.constant dense<0.000000e+00> : vector<96x8xf32>
    %11 = tpu.matmul %10, %9, %cst {dimension_numbers = #tpu.dot_dimension_numbers<[1], [0], [0], [1], [0, 0, 1, 1], [], []>} : vector<96x32xbf16>, vector<32x8xbf16>, vector<96x8xf32> -> vector<96x8xf32>
    %c0_10 = arith.constant 0 : index
    %c0_11 = arith.constant 0 : index
    %12 = vector.load %arg5[%c0_10, %c0_11] : memref<96x1xbf16, #tpu.memory_space<vmem>>, vector<96x1xbf16>
    %13 = arith.extf %12 : vector<96x1xbf16> to vector<96x1xf32>
    %14 = vector.broadcast %13 : vector<96x1xf32> to vector<96x8xf32>
    %15 = arith.addf %11, %14 : vector<96x8xf32>
    %16 = vector.extract_strided_slice %15 {offsets = [0, 0], sizes = [32, 8], strides = [1, 1]} : vector<96x8xf32> to vector<32x8xf32>
    %17 = vector.shape_cast %16 : vector<32x8xf32> to vector<4x8x8xf32>
    %18 = vector.extract_strided_slice %15 {offsets = [32, 0], sizes = [32, 8], strides = [1, 1]} : vector<96x8xf32> to vector<32x8xf32>
    %19 = vector.shape_cast %18 : vector<32x8xf32> to vector<4x8x8xf32>
    %20 = arith.truncf %19 : vector<4x8x8xf32> to vector<4x8x8xbf16>
    %21 = vector.extract_strided_slice %15 {offsets = [64, 0], sizes = [32, 8], strides = [1, 1]} : vector<96x8xf32> to vector<32x8xf32>
    %22 = vector.shape_cast %21 : vector<32x8xf32> to vector<4x8x8xf32>
    %23 = arith.truncf %22 : vector<4x8x8xf32> to vector<4x8x8xbf16>
    %24 = tpu.transpose %17, [0, 2, 1] : vector<4x8x8xf32> -> vector<4x8x8xf32>
    %25 = arith.truncf %24 : vector<4x8x8xf32> to vector<4x8x8xbf16>
    "tpu.trace_start"() <{level = 10 : i32, message = "hqd,hdk->hqk"}> : () -> ()
    %cst_12 = arith.constant dense<0.000000e+00> : vector<4x8x8xf32>
    %26 = tpu.matmul %25, %20, %cst_12 {dimension_numbers = #tpu.dot_dimension_numbers<[2], [1], [1], [2], [0, 0, 0, 1, 1, 2], [0], [0]>} : vector<4x8x8xbf16>, vector<4x8x8xbf16>, vector<4x8x8xf32> -> vector<4x8x8xf32>
    "tpu.trace_stop"() : () -> ()
    %c0_13 = arith.constant 0 : index
    %c0_14 = arith.constant 0 : index
    %c0_15 = arith.constant 0 : index
    %27 = vector.load %arg3[%c0_13, %c0_14, %c0_15] : memref<1x8x8xbf16, #tpu.memory_space<vmem>>, vector<1x8x8xbf16>
    %28 = vector.shape_cast %27 : vector<1x8x8xbf16> to vector<8x8xbf16>
    %29 = arith.extf %28 : vector<8x8xbf16> to vector<8x8xf32>
    %30 = vector.shape_cast %29 : vector<8x8xf32> to vector<1x8x8xf32>
    %31 = vector.broadcast %30 : vector<1x8x8xf32> to vector<4x8x8xf32>
    %32 = arith.addf %26, %31 : vector<4x8x8xf32>
    %cst_16 = arith.constant dense<0xFF800000> : vector<4x8xf32>
    %33 = vector.multi_reduction <maximumf>, %32, %cst_16 [2] : vector<4x8x8xf32> to vector<4x8xf32>
    %34 = vector.shape_cast %33 : vector<4x8xf32> to vector<4x8x1xf32>
    %35 = vector.broadcast %34 : vector<4x8x1xf32> to vector<4x8x8xf32>
    %36 = arith.subf %32, %35 : vector<4x8x8xf32>
    %37 = math.exp %36 : vector<4x8x8xf32>
    %cst_17 = arith.constant dense<0.000000e+00> : vector<4x8xf32>
    %38 = vector.multi_reduction <add>, %37, %cst_17 [2] : vector<4x8x8xf32> to vector<4x8xf32>
    %39 = vector.shape_cast %38 : vector<4x8xf32> to vector<4x8x1xf32>
    %40 = tpu.reciprocal %39 {approx = true} : vector<4x8x1xf32> -> vector<4x8x1xf32>
    %41 = vector.broadcast %40 : vector<4x8x1xf32> to vector<4x8x8xf32>
    %42 = arith.mulf %37, %41 : vector<4x8x8xf32>
    %43 = arith.truncf %42 : vector<4x8x8xf32> to vector<4x8x8xbf16>
    "tpu.trace_start"() <{level = 10 : i32, message = "hdk,hqk->hdq"}> : () -> ()
    %cst_18 = arith.constant dense<0.000000e+00> : vector<4x8x8xf32>
    %44 = tpu.matmul %23, %43, %cst_18 {dimension_numbers = #tpu.dot_dimension_numbers<[2], [2], [1], [1], [0, 0, 0, 1, 1, 1], [0], [0]>} : vector<4x8x8xbf16>, vector<4x8x8xbf16>, vector<4x8x8xf32> -> vector<4x8x8xf32>
    "tpu.trace_stop"() : () -> ()
    %45 = vector.shape_cast %44 : vector<4x8x8xf32> to vector<32x8xf32>
    %46 = tpu.transpose %45, [1, 0] : vector<32x8xf32> -> vector<8x32xf32>
    %47 = arith.truncf %46 : vector<8x32xf32> to vector<8x32xbf16>
    %c0_19 = arith.constant 0 : index
    %c0_20 = arith.constant 0 : index
    %48 = vector.load %arg6[%c0_19, %c0_20] : memref<32x32xbf16, #tpu.memory_space<vmem>>, vector<32x32xbf16>
    %cst_21 = arith.constant dense<0.000000e+00> : vector<8x32xf32>
    %49 = tpu.matmul %47, %48, %cst_21 {dimension_numbers = #tpu.dot_dimension_numbers<[1], [0], [0], [1], [0, 0, 1, 1], [], []>} : vector<8x32xbf16>, vector<32x32xbf16>, vector<8x32xf32> -> vector<8x32xf32>
    %c0_22 = arith.constant 0 : index
    %c0_23 = arith.constant 0 : index
    %50 = vector.load %arg7[%c0_22, %c0_23] : memref<1x32xbf16, #tpu.memory_space<vmem>>, vector<1x32xbf16>
    %51 = arith.extf %50 : vector<1x32xbf16> to vector<1x32xf32>
    %52 = vector.broadcast %51 : vector<1x32xf32> to vector<8x32xf32>
    %53 = arith.addf %49, %52 : vector<8x32xf32>
    %54 = arith.addf %3, %53 : vector<8x32xf32>
    %55 = vector.shape_cast %54 : vector<8x32xf32> to vector<1x8x32xf32>
    %cst_24 = arith.constant dense<0.000000e+00> : vector<1xf32>
    %56 = vector.multi_reduction <add>, %55, %cst_24 [1, 2] : vector<1x8x32xf32> to vector<1xf32>
    %57 = vector.shape_cast %56 : vector<1xf32> to vector<1x1x1xf32>
    %58 = vector.extract %57[0, 0, 0] : f32 from vector<1x1x1xf32>
    %cst_25 = arith.constant 2.560000e+02 : f32
    %59 = arith.divf %58, %cst_25 : f32
    %60 = arith.mulf %54, %54 : vector<8x32xf32>
    %61 = vector.shape_cast %60 : vector<8x32xf32> to vector<1x8x32xf32>
    %cst_26 = arith.constant dense<0.000000e+00> : vector<1xf32>
    %62 = vector.multi_reduction <add>, %61, %cst_26 [1, 2] : vector<1x8x32xf32> to vector<1xf32>
    %63 = vector.shape_cast %62 : vector<1xf32> to vector<1x1x1xf32>
    %64 = vector.extract %63[0, 0, 0] : f32 from vector<1x1x1xf32>
    %cst_27 = arith.constant 2.560000e+02 : f32
    %65 = arith.divf %64, %cst_27 : f32
    %66 = arith.mulf %59, %59 : f32
    %67 = arith.subf %65, %66 : f32
    %68 = vector.broadcast %59 : f32 to vector<8x32xf32>
    %69 = arith.subf %54, %68 : vector<8x32xf32>
    %cst_28 = arith.constant 9.99999974E-6 : f32
    %70 = arith.addf %67, %cst_28 : f32
    %71 = math.rsqrt %70 : f32
    %72 = vector.broadcast %71 : f32 to vector<8x32xf32>
    %73 = arith.mulf %69, %72 : vector<8x32xf32>
    %74 = arith.mulf %73, %5 : vector<8x32xf32>
    %75 = arith.addf %74, %7 : vector<8x32xf32>
    %76 = arith.truncf %75 : vector<8x32xf32> to vector<8x32xbf16>
    %c0_29 = arith.constant 0 : index
    %c0_30 = arith.constant 0 : index
    %77 = vector.load %arg8[%c0_29, %c0_30] : memref<32x32xbf16, #tpu.memory_space<vmem>>, vector<32x32xbf16>
    %cst_31 = arith.constant dense<0.000000e+00> : vector<8x32xf32>
    %78 = tpu.matmul %76, %77, %cst_31 {dimension_numbers = #tpu.dot_dimension_numbers<[1], [0], [0], [1], [0, 0, 1, 1], [], []>} : vector<8x32xbf16>, vector<32x32xbf16>, vector<8x32xf32> -> vector<8x32xf32>
    %c0_32 = arith.constant 0 : index
    %c0_33 = arith.constant 0 : index
    %79 = vector.load %arg9[%c0_32, %c0_33] : memref<1x32xbf16, #tpu.memory_space<vmem>>, vector<1x32xbf16>
    %80 = arith.extf %79 : vector<1x32xbf16> to vector<1x32xf32>
    %81 = vector.broadcast %80 : vector<1x32xf32> to vector<8x32xf32>
    %82 = arith.addf %78, %81 : vector<8x32xf32>
    %83 = arith.addf %75, %82 : vector<8x32xf32>
    %84 = vector.shape_cast %83 : vector<8x32xf32> to vector<1x8x32xf32>
    %cst_34 = arith.constant dense<0.000000e+00> : vector<1xf32>
    %85 = vector.multi_reduction <add>, %84, %cst_34 [1, 2] : vector<1x8x32xf32> to vector<1xf32>
    %86 = vector.shape_cast %85 : vector<1xf32> to vector<1x1x1xf32>
    %87 = vector.extract %86[0, 0, 0] : f32 from vector<1x1x1xf32>
    %cst_35 = arith.constant 2.560000e+02 : f32
    %88 = arith.divf %87, %cst_35 : f32
    %89 = arith.mulf %83, %83 : vector<8x32xf32>
    %90 = vector.shape_cast %89 : vector<8x32xf32> to vector<1x8x32xf32>
    %cst_36 = arith.constant dense<0.000000e+00> : vector<1xf32>
    %91 = vector.multi_reduction <add>, %90, %cst_36 [1, 2] : vector<1x8x32xf32> to vector<1xf32>
    %92 = vector.shape_cast %91 : vector<1xf32> to vector<1x1x1xf32>
    %93 = vector.extract %92[0, 0, 0] : f32 from vector<1x1x1xf32>
    %cst_37 = arith.constant 2.560000e+02 : f32
    %94 = arith.divf %93, %cst_37 : f32
    %95 = arith.mulf %88, %88 : f32
    %96 = arith.subf %94, %95 : f32
    %97 = vector.broadcast %88 : f32 to vector<8x32xf32>
    %98 = arith.subf %83, %97 : vector<8x32xf32>
    %cst_38 = arith.constant 9.99999974E-6 : f32
    %99 = arith.addf %96, %cst_38 : f32
    %100 = math.rsqrt %99 : f32
    %101 = vector.broadcast %100 : f32 to vector<8x32xf32>
    %102 = arith.mulf %98, %101 : vector<8x32xf32>
    %103 = arith.mulf %102, %5 : vector<8x32xf32>
    %104 = arith.addf %103, %7 : vector<8x32xf32>
    %c0_39 = arith.constant 0 : index
    %c0_40 = arith.constant 0 : index
    %c0_41 = arith.constant 0 : index
    %105 = vector.load %arg12[%c0_39, %c0_40, %c0_41] : memref<1x8x32xf32, #tpu.memory_space<vmem>>, vector<1x8x32xf32>
    %106 = vector.shape_cast %105 : vector<1x8x32xf32> to vector<8x32xf32>
    %107 = vector.shape_cast %104 : vector<8x32xf32> to vector<1x8x32xf32>
    tpu.vector_store %arg12[%c0_39, %c0_40, %c0_41], %107 {strides = array<i32>} : memref<1x8x32xf32, #tpu.memory_space<vmem>>, vector<1x8x32xf32>,
    return
  }
  func.func @transform_0(%arg0: i32) -> (i32, i32, i32) {
    %c0_i32 = arith.constant 0 : i32
    %c0_i32_0 = arith.constant 0 : i32
    %c0_i32_1 = arith.constant 0 : i32
    return %arg0, %c0_i32, %c0_i32_0 : i32, i32, i32
  }
  func.func @transform_1(%arg0: i32) -> (i32, i32) {
    %c0_i32 = arith.constant 0 : i32
    %c0_i32_0 = arith.constant 0 : i32
    %c0_i32_1 = arith.constant 0 : i32
    return %c0_i32, %c0_i32_0 : i32, i32
  }
  func.func @transform_2(%arg0: i32) -> (i32, i32, i32) {
    %c0_i32 = arith.constant 0 : i32
    %c0_i32_0 = arith.constant 0 : i32
    %c0_i32_1 = arith.constant 0 : i32
    return %arg0, %c0_i32, %c0_i32_0 : i32, i32, i32
  }
  func.func @transform_3(%arg0: i32) -> (i32, i32) {
    %c0_i32 = arith.constant 0 : i32
    %c0_i32_0 = arith.constant 0 : i32
    %c0_i32_1 = arith.constant 0 : i32
    return %c0_i32, %c0_i32_0 : i32, i32
  }
  func.func @transform_4(%arg0: i32) -> (i32, i32) {
    %c0_i32 = arith.constant 0 : i32
    %c0_i32_0 = arith.constant 0 : i32
    %c0_i32_1 = arith.constant 0 : i32
    return %c0_i32, %c0_i32_0 : i32, i32
  }
  func.func @transform_5(%arg0: i32) -> (i32, i32) {
    %c0_i32 = arith.constant 0 : i32
    %c0_i32_0 = arith.constant 0 : i32
    %c0_i32_1 = arith.constant 0 : i32
    return %c0_i32, %c0_i32_0 : i32, i32
  }
  func.func @transform_6(%arg0: i32) -> (i32, i32) {
    %c0_i32 = arith.constant 0 : i32
    %c0_i32_0 = arith.constant 0 : i32
    %c0_i32_1 = arith.constant 0 : i32
    return %c0_i32, %c0_i32_0 : i32, i32
  }
  func.func @transform_7(%arg0: i32) -> (i32, i32) {
    %c0_i32 = arith.constant 0 : i32
    %c0_i32_0 = arith.constant 0 : i32
    %c0_i32_1 = arith.constant 0 : i32
    return %c0_i32, %c0_i32_0 : i32, i32
  }
  func.func @transform_8(%arg0: i32) -> (i32, i32) {
    %c0_i32 = arith.constant 0 : i32
    %c0_i32_0 = arith.constant 0 : i32
    %c0_i32_1 = arith.constant 0 : i32
    return %c0_i32, %c0_i32_0 : i32, i32
  }
  func.func @transform_9(%arg0: i32) -> (i32, i32) {
    %c0_i32 = arith.constant 0 : i32
    %c0_i32_0 = arith.constant 0 : i32
    %c0_i32_1 = arith.constant 0 : i32
    return %c0_i32, %c0_i32_0 : i32, i32
  }
  func.func @transform_10(%arg0: i32) -> (i32, i32) {
    %c0_i32 = arith.constant 0 : i32
    %c0_i32_0 = arith.constant 0 : i32
    %c0_i32_1 = arith.constant 0 : i32
    return %c0_i32, %c0_i32_0 : i32, i32
  }
  func.func @transform_11(%arg0: i32) -> (i32, i32, i32) {
    %c0_i32 = arith.constant 0 : i32
    %c0_i32_0 = arith.constant 0 : i32
    %c0_i32_1 = arith.constant 0 : i32
    return %arg0, %c0_i32, %c0_i32_0 : i32, i32, i32
  }
}

</mosaic_0001>

<bundles_post_ra>
// kernel: tpu_custom_call.1
= control target key start
LH: loop header
LB: loop body
LE: loop exit
PB: predicated region body
PF: predicated region fallthrough
CT: control target
= control target key end

     0   :  { %16 = vsyncpa [#allocation3], 0  ;;  %s1838_s0 = inlined_call_operand.vmem [shape: f32[2,8,32], index: 0, kind: input, shape index: {}]   ;;  %s1839_s1 = inlined_call_operand.vmem [shape: f32[8,32], index: 1, kind: input, shape index: {}]   ;;  %s1840_s2 = inlined_call_operand.vmem [shape: bf16[2,8,8], index: 2, kind: input, shape index: {}]   ;;  %s1841_s3 = inlined_call_operand.vmem [shape: bf16[96,32], index: 3, kind: input, shape index: {}]   ;;  %s1842_s4 = inlined_call_operand.vmem [shape: bf16[96,1], index: 4, kind: input, shape index: {}]   ;;  %s1843_s5 = inlined_call_operand.vmem [shape: bf16[32,32], index: 5, kind: input, shape index: {}]   ;;  %s1844_s6 = inlined_call_operand.vmem [shape: bf16[1,32], index: 6, kind: input, shape index: {}]   ;;  %s1845_s7 = inlined_call_operand.vmem [shape: bf16[32,32], index: 7, kind: input, shape index: {}]   ;;  %s1846_s8 = inlined_call_operand.vmem [shape: bf16[1,32], index: 8, kind: input, shape index: {}]   ;;  %s1847_s9 = inlined_call_operand.vmem [shape: bf16[8,32], index: 9, kind: input, shape index: {}]   ;;  %s1848_s10 = inlined_call_operand.vmem [shape: bf16[8,32], index: 10, kind: input, shape index: {}]   ;;  %s1849_s11 = inlined_call_operand.hbm [shape: f32[2,8,32], index: 11, kind: output, shape index: {}]  }
   0x1   :  { %18 = vsyncpa [#allocation3 + $0x1], 0  ;;  %s1610_s17 = smov 0   ;;  %s1612_s18 = smov 0  }
   0x2   :  { %s1614_s19 = smov 0   ;;  %s1616_s20 = smov 0  }
   0x3 LB: > { %s1631_s21 = sadd.s32 4294967295, %s1546_s20   ;;  %s1283_s22 = sadd.s32 4294967294, %s1546_s20   ;;  %s1546_s20 = sphi %s1616_s20, %s1857_s20   ;;  %s1542_s19 = sphi %s1614_s19, %s1856_s19   ;;  %s1538_s18 = sphi %s1612_s18, %s1855_s18   ;;  %s1534_s17 = sphi %s1610_s17, %s1854_s17  }
   0x4   : > { %s1635_s23 = sadd.s32 1, %s1546_s20   ;;  %s272_s24 = sadd.s32 1, %s1542_s19 }
   0x5   : > { %s269_s25 = ssub.s32 %s1546_s20, %s1635_s23  ;;  %p282_p0 = scmp.ne.s32.totalorder %s1542_s19, %s1538_s18 }
   0x6   : > { %p270_p1 = scmp.eq.s32.totalorder %s269_s25, 0  ;;  %p283_p2 = scmp.eq.s32.totalorder %s1631_s21, 1 }
   0x7   : > { %p288_p3 = scmp.ne.s32.totalorder %s1538_s18, %s1534_s17  ;;  %p289_p4 = scmp.eq.s32.totalorder %s1283_s22, 1 }
   0x8   : > { %s1646_s26 = scalar_select %p270_p1, %s1542_s19, %s272_s24  }
   0x9   : > { %p1648_p5 = por %p283_p2, %p282_p0  ;;  %p1652_p6 = por %p289_p4, %p288_p3 }
   0xa   : > { %1850 = sst [smem:[#allocation5_spill]] %s1646_s26  ;;  %p1286_p7 = scmp.ge.s32.totalorder %s1546_s20, 1 }
   0xb   : > { %p348_p8 = scmp.lt.s32.totalorder %s1546_s20, 3 }
   0xd   : > { %p349_p9 = pnand %p1286_p7, %p348_p8 }
   0xe   : > { %p391_p10 = scmp.lt.s32.totalorder (!%p349_p9), %s1631_s21, 1 }
   0xf   : > { %352 = sbr.rel (%p349_p9) target bundleno = 2024 (0x7e8), region = 64 }
  0x14   : > { %s1660_s29 = scalar_select %p391_p10, %s1631_s21, 1  ;;  %v401_v0 = vld [vmem:[%s1839_s1] sm:$0xff]  ;;  %v1384_v7 = vld [vmem:[%s1842_s4 + $0x8] sm:$0xff]   ;;  %v1385_v8 = vld [vmem:[%s1842_s4 + $0x10] sm:$0xff]   ;;  %v1548_v9 = vmov 0   ;;  %vm567_vm0 = vcmask 261120  }
  0x15   : > { %v1361_v4 = vld [vmem:[%s1842_s4] sm:$0xff]   ;;  %1450 = vset.pattern.permute.xlu1 %v1548_v9  ;;  %v1366_v10 = vunpack.c.l.bf16 %v1384_v7  ;;  %v1370_v11 = vunpack.c.l.bf16 %v1385_v8  ;;  %1456 = vset.pattern.permute.xlu2 %v1548_v9  ;;  %v1386_v15 = vld [vmem:[%s1842_s4 + $0x18] sm:$0xff]   ;;  %v1351_v21 = vld [vmem:[%s1841_s3 + $0x8] sm:$0xff]  ;;  %v1367_v22 = vunpack.c.h.bf16 %v1384_v7  ;;  %v1371_v23 = vunpack.c.h.bf16 %v1385_v8 }
  0x16   : > { %s1288_s30 = sshll.u32 %s1660_s29, 3  ;;  %v1363_v5 = vunpack.c.h.bf16 %v1361_v4  ;;  %v1362_v6 = vunpack.c.l.bf16 %v1361_v4  ;;  %v1375_v16 = vunpack.c.h.bf16 %v1386_v15  ;;  %v1350_v20 = vld [vmem:[%s1841_s3] sm:$0xff]  ;;  %v1374_v25 = vunpack.c.l.bf16 %v1386_v15  ;;  %v1352_v26 = vld [vmem:[%s1841_s3 + $0x10] sm:$0xff]  ;;  %v1353_v27 = vld [vmem:[%s1841_s3 + $0x18] sm:$0xff] }
  0x17   : > { %s394_s16 = scalar_lea.vmem %s1838_s0, %s1288_s30  ;;  %v1451_v13 = vpack.i.bf16 %v1366_v10, %v1370_v11  ;;  %v1457_v24 = vpack.i.bf16 %v1371_v23, %v1367_v22  ;;  %v1354_v42 = vld [vmem:[%s1841_s3 + $0x20] sm:$0xff]  ;;  %vm771_vm1 = vcmask 1043456   ;;  %v1355_v63 = vld [vmem:[%s1841_s3 + $0x28] sm:$0xff]  ;;  %vm767_vm2 = vcmask 64512  }
  0x18   : > { %v400_v1 = vld [vmem:[%s394_s16] sm:$0xff]  ;;  %484 = vperm.xlu1 %1450, %v1363_v5   ;;  %s1289_s16 = sshll.u32 %s1660_s29, 2 }
  0x19   : > { %v1669_v2 = vadd.f32 %v401_v0, %v400_v1  ;;  %1458 = vperm.xlu2 %1456, %v1457_v24   ;;  %s398_s25 = scalar_lea.vmem %s1840_s2, %s1289_s16 }
  0x1b   : > { %407 = vxpose.xlu0.b32.start.end [1/1] (short) (narrow) %v1669_v2, 32 }
  0x20   : > { %1452 = vperm.xlu1 %1450, %v1451_v13  }
  0x21   : > { %509 = vperm.xlu2 %1456, %v1374_v25  }
  0x28   : > { %514 = vperm.xlu1 %1450, %v1375_v16  }
  0x73   : > { %v1459_v38 = vpop.permute.xlu2 %1458 }
  0x74   : > { %v1460_v39 = vunpack.i.l.bf16 %v1459_v38  ;;  %v1461_v48 = vunpack.i.h.bf16 %v1459_v38 }
  0x7b   : > { %v510_v53 = vpop.permute.xlu2 %509 }
  0x82   : > { %1449 = vset.pattern.permute.xlu0 %v1548_v9  ;;  %v765_v9 = vld [vmem:[%s398_s25] sm:$0xf] }
  0x83   : > { %v766_v10 = vunpack.c.l.bf16 %v765_v9 }
  0x8a   : > { %v485_v31 = vpop.permute.xlu1 %484 }
  0x92   : > { %v1453_v34 = vpop.permute.xlu1 %1452 }
  0x93   : > { %v1455_v35 = vunpack.i.h.bf16 %v1453_v34  ;;  %v1454_v43 = vunpack.i.l.bf16 %v1453_v34 }
  0x9a   : > { %v515_v58 = vpop.permute.xlu1 %514 }
  0xa1   : > { %479 = vperm.xlu0 %1449, %v1362_v6  }
  0xbf   : > { %v423_v3 = vpop.trf.xlu0 }
  0xc7   : > { %v424_v12 = vpop.trf.xlu0 }
  0xc8   : > { %v439_v19 = vpack.c.bf16 %v424_v12, %v423_v3 }
  0xcf   : > { %v425_v14 = vpop.trf.xlu0 }
  0xd7   : > { %v426_v17 = vpop.trf.xlu0 }
  0xd8   : > { %v440_v18 = vpack.c.bf16 %v426_v17, %v425_v14 }
  0xda   : > { %592 = vmatpush.bf16.msra.mxu0 %v440_v18  ;;  %1389 = vmatpush.bf16.msra.mxu2 %v440_v18 }
  0xdb   : > { %1390 = vmatpush.bf16.msra.mxu3 %v440_v18 }
  0xde   : > { %593 = vmatpush.bf16.msra.mxu0 %v439_v19  ;;  %1391 = vmatpush.bf16.msra.mxu2 %v439_v19 }
  0xdf   : > { %1392 = vmatpush.bf16.msra.mxu3 %v439_v19 }
  0xe1   : > { %1314 = vmatmul.msk.bf16.vlgmr.msra.gmra.mxu0 %vm567_vm0, %v1350_v20  ;;  %1318 = vmatmul.msk.bf16.vlgmr.msra.gmra.mxu2 %vm567_vm0, %v1354_v42 }
  0xe2   : > { %1319 = vmatmul.msk.bf16.vlgmr.msra.gmra.mxu3 %vm567_vm0, %v1355_v63 }
  0xf1   : > { %1315 = vmatmul.msk.bf16.gmra.mxu0 %vm567_vm0, %v1351_v21 }
 0x101   : > { %1316 = vmatmul.msk.bf16.gmra.mxu0 %vm567_vm0, %v1352_v26 }
 0x111   : > { %1317 = vmatmul.msk.bf16.gmra.mxu0 %vm567_vm0, %v1353_v27 }
 0x113   : > { %v480_v28 = vpop.permute.xlu0 %479 }
 0x15e   : > { %v595_v29 = vpop.f32.mrf.mxu0 }
 0x15f   : > { %v596_v30 = vadd.f32 %v595_v29, %v480_v28 }
 0x161   : > { %633 = vxpose.xlu2.b32.start.end [1/1] (short) (narrow) %v596_v30, 8 }
 0x164   : > { %v1723_v15 = vpop.f32.mrf.mxu2 }
 0x165   : > { %v1720_v13 = vpop.f32.mrf.mxu3 }
 0x166   : > { %v597_v32 = vpop.f32.mrf.mxu0 }
 0x167   : > { %v598_v33 = vadd.f32 %v597_v32, %v485_v31  ;;  %v1387_v31 = vld [vmem:[%s1842_s4 + $0x20] sm:$0xff]  }
 0x168   : > { %v1378_v32 = vunpack.c.l.bf16 %v1387_v31 }
 0x169   : > { %665 = vxpose.xlu1.b32.start.end [1/1] (short) (narrow) %v598_v33, 8  ;;  %v1388_v33 = vld [vmem:[%s1842_s4 + $0x28] sm:$0xff]  }
 0x16a   : > { %v1382_v34 = vunpack.c.l.bf16 %v1388_v33 }
 0x16c   : > { %v1727_v18 = vpop.f32.mrf.mxu2 }
 0x16d   : > { %v1725_v17 = vpop.f32.mrf.mxu3 }
 0x16e   : > { %v600_v36 = vpop.f32.mrf.mxu0 }
 0x16f   : > { %v601_v37 = vadd.f32 %v1455_v35, %v600_v36 }
 0x171   : > { %697 = vxpose.xlu2.b32.start.end [1/1] (short) (narrow) %v601_v37, 8 }
 0x176   : > { %v602_v40 = vpop.f32.mrf.mxu0 }
 0x177   : > { %v603_v41 = vadd.f32 %v1460_v39, %v602_v40 }
 0x179   : > { %729 = vxpose.xlu2.b32.start.end [1/1] (short) (narrow) %v603_v41, 8 }
 0x17e   : > { %v605_v44 = vpop.f32.mrf.mxu0 }
 0x17f   : > { %v606_v45 = vadd.f32 %v1454_v43, %v605_v44 }
 0x181   : > { %v625_v46 = vpack.c.bf16 %v606_v45, %v606_v45 }
 0x183   : > { %v773_v47 = vsel %vm771_vm1, %v625_v46, 0 }
 0x184   : > { %782 = vmatpush.bf16.msra.mxu1 %v773_v47 }
 0x186   : > { %v607_v49 = vpop.f32.mrf.mxu0 }
 0x187   : > { %v608_v50 = vadd.f32 %v1461_v48, %v607_v49 }
 0x189   : > { %v626_v51 = vpack.c.bf16 %v608_v50, %v608_v50 }
 0x18b   : > { %v792_v52 = vsel %vm771_vm1, %v626_v51, 0 }
 0x18c   : > { %801 = vmatpush.bf16.msrb.mxu2 %v792_v52 }
 0x18e   : > { %v610_v54 = vpop.f32.mrf.mxu0 }
 0x18f   : > { %v611_v55 = vadd.f32 %v610_v54, %v510_v53 }
 0x191   : > { %v627_v56 = vpack.c.bf16 %v611_v55, %v611_v55  ;;  %v1379_v55 = vunpack.c.h.bf16 %v1387_v31 }
 0x193   : > { %v811_v57 = vsel %vm771_vm1, %v627_v56, 0  ;;  %v1383_v56 = vunpack.c.h.bf16 %v1388_v33 }
 0x194   : > { %820 = vmatpush.bf16.msrb.mxu3 %v811_v57 }
 0x196   : > { %v612_v59 = vpop.f32.mrf.mxu0 }
 0x197   : > { %v613_v60 = vadd.f32 %v612_v59, %v515_v58 }
 0x199   : > { %v628_v61 = vpack.c.bf16 %v613_v60, %v613_v60 }
 0x19b   : > { %v830_v62 = vsel %vm771_vm1, %v628_v61, 0 }
 0x19c   : > { %839 = vmatpush.bf16.msrb.mxu1 %v830_v62 }
 0x1fa   : > { %v649_v0 = vpop.trf.xlu2 }
 0x1fb   : > { %v761_v1 = vpack.c.bf16 %v649_v0, %v649_v0 }
 0x1fd   : > { %1320 = vmatmul.msk.bf16.vlgmr.msra.gmra.mxu1 %vm767_vm2, %v761_v1 }
 0x20a   : > { %v713_v3 = vpop.trf.xlu2 }
 0x20b   : > { %v763_v4 = vpack.c.bf16 %v713_v3, %v713_v3 }
 0x20d   : > { %v681_v5 = vpop.trf.xlu1  ;;  %1322 = vmatmul.msk.bf16.vlgmr.msrb.gmra.mxu3 %vm767_vm2, %v763_v4 }
 0x20e   : > { %v762_v6 = vpack.c.bf16 %v681_v5, %v681_v5 }
 0x210   : > { %1321 = vmatmul.msk.bf16.vlgmr.msrb.gmra.mxu2 %vm767_vm2, %v762_v6 }
 0x212   : > { %v745_v7 = vpop.trf.xlu2 }
 0x213   : > { %v764_v8 = vpack.c.bf16 %v745_v7, %v745_v7 }
 0x215   : > { %1323 = vmatmul.msk.bf16.vlgmr.msrb.gmra.mxu1 %vm767_vm2, %v764_v8 }
 0x27a   : > { %v784_v11 = vpop.f32.mrf.mxu1 }
 0x27b   : > { %v785_v12 = vadd.f32 %v784_v11, %v766_v10 }
 0x27d   : > { %v845_v14 = vsel %vm767_vm2, %v785_v12, -inf }
 0x27e   : > { %846 = vmax.xlane.f32.xlu2 %v845_v14 }
 0x282   : > { %v786_v16 = vpop.f32.mrf.mxu1 }
 0x290   : > { %v822_v19 = vpop.f32.mrf.mxu3 }
 0x291   : > { %v823_v27 = vadd.f32 %v822_v19, %v766_v10 }
 0x292   : > { %v841_v20 = vpop.f32.mrf.mxu1 }
 0x293   : > { %v842_v21 = vadd.f32 %v841_v20, %v766_v10  ;;  %v803_v22 = vpop.f32.mrf.mxu2  ;;  %v851_v30 = vsel %vm767_vm2, %v823_v27, -inf }
 0x294   : > { %v804_v23 = vadd.f32 %v803_v22, %v766_v10 }
 0x295   : > { %v854_v24 = vsel %vm767_vm2, %v842_v21, -inf }
 0x296   : > { %855 = vmax.xlane.f32.xlu0 %v854_v24  ;;  %v848_v25 = vsel %vm767_vm2, %v804_v23, -inf }
 0x297   : > { %849 = vmax.xlane.f32.xlu1 %v848_v25 }
 0x298   : > { %v824_v26 = vpop.f32.mrf.mxu3 }
 0x29a   : > { %v843_v28 = vpop.f32.mrf.mxu1 }
 0x29b   : > { %v805_v29 = vpop.f32.mrf.mxu2 }
 0x29f   : > { %852 = vmax.xlane.f32.xlu1 %v851_v30  ;;  %v1357_v30 = vld [vmem:[%s1843_s5 + $0x8] sm:$0xff] }
 0x2aa   : > { %519 = vperm.xlu0 %1449, %v1378_v32  }
 0x2b2   : > { %529 = vperm.xlu0 %1449, %v1382_v34  }
 0x2f1   : > { %v847_v35 = vpop.xlane.xlu2 %846 }
 0x2f2   : > { %v857_v36 = vsub.f32 %v785_v12, %v847_v35 }
 0x2f4   : > { %v861_v37 = vmul.f32 1.442695, %v857_v36 }
 0x2f6   : > { %1462 = vpow2.f32 %v861_v37 }
 0x2fc   : > { %v1463_v38 = vpop.eup %1462 }
 0x2fd   : > { %v869_v39 = vsel %vm767_vm2, %v1463_v38, 0.0 }
 0x2fe   : > { %870 = vadd.xlane.f32.xlu1 %v869_v39 }
 0x309   : > { %v856_v40 = vpop.xlane.xlu0 %855 }
 0x30a   : > { %v860_v41 = vsub.f32 %v842_v21, %v856_v40  ;;  %v850_v42 = vpop.xlane.xlu1 %849 }
 0x30b   : > { %v858_v43 = vsub.f32 %v804_v23, %v850_v42 }
 0x30c   : > { %v867_v44 = vmul.f32 1.442695, %v860_v41 }
 0x30d   : > { %v863_v45 = vmul.f32 1.442695, %v858_v43 }
 0x30e   : > { %1464 = vpow2.f32 %v867_v44 }
 0x30f   : > { %1466 = vpow2.f32 %v863_v45 }
 0x312   : > { %v853_v46 = vpop.xlane.xlu1 %852 }
 0x313   : > { %v859_v47 = vsub.f32 %v823_v27, %v853_v46 }
 0x314   : > { %v1465_v48 = vpop.eup %1464 }
 0x315   : > { %v1467_v49 = vpop.eup %1466  ;;  %v865_v50 = vmul.f32 1.442695, %v859_v47  ;;  %v878_v51 = vsel %vm767_vm2, %v1465_v48, 0.0 }
 0x316   : > { %879 = vadd.xlane.f32.xlu1 %v878_v51  ;;  %v872_v52 = vsel %vm767_vm2, %v1467_v49, 0.0 }
 0x317   : > { %1468 = vpow2.f32 %v865_v50  ;;  %873 = vadd.xlane.f32.xlu2 %v872_v52 }
 0x31c   : > { %v520_v61 = vpop.permute.xlu0 %519 }
 0x31d   : > { %v1469_v53 = vpop.eup %1468  ;;  %v616_v63 = vadd.f32 %v1723_v15, %v520_v61 }
 0x31e   : > { %v875_v54 = vsel %vm767_vm2, %v1469_v53, 0.0 }
 0x31f   : > { %876 = vadd.xlane.f32.xlu2 %v875_v54  ;;  %v629_v0 = vpack.c.bf16 %v616_v63, %v616_v63 }
 0x324   : > { %v530_v21 = vpop.permute.xlu0 %529 }
 0x325   : > { %v621_v24 = vadd.f32 %v1720_v13, %v530_v21  ;;  %v1356_v13 = vld [vmem:[%s1843_s5] sm:$0xff] }
 0x327   : > { %v631_v27 = vpack.c.bf16 %v621_v24, %v621_v24 }
 0x32f   : > { %524 = vperm.xlu1 %1450, %v1379_v55  }
 0x337   : > { %534 = vperm.xlu2 %1456, %v1383_v56  }
 0x371   : > { %v871_v57 = vpop.xlane.xlu1 %870 }
 0x372   : > { %1470 = vrcp.f32 %v871_v57 }
 0x378   : > { %v1471_v58 = vpop.eup %1470 }
 0x379   : > { %v885_v59 = vmul.f32 %v1471_v58, %v1463_v38  ;;  %v1006_v38 = vld [vmem:[%s1844_s6] sm:$0x1] }
 0x37a   : > { %v1007_v39 = vunpack.c.l.bf16 %v1006_v38 }
 0x37b   : > { %v889_v60 = vpack.c.bf16 %v885_v59, %v885_v59 }
 0x37c   : > { %v1008_v40 = vperm.slane %v1007_v39, 0 }
 0x37d   : > { %v897_v62 = vsel %vm767_vm2, %v889_v60, 0 }
 0x37e   : > { %906 = vmatpush.bf16.xpose.msra.mxu2 %v897_v62 }
 0x385   : > { %1324 = vmatmul.msk.bf16.vlgmr.msra.gmra.mxu2 %vm767_vm2, %v629_v0 }
 0x389   : > { %v880_v1 = vpop.xlane.xlu1 %879 }
 0x38a   : > { %1472 = vrcp.f32 %v880_v1  ;;  %v874_v3 = vpop.xlane.xlu2 %873 }
 0x38b   : > { %1474 = vrcp.f32 %v874_v3 }
 0x390   : > { %v1473_v4 = vpop.eup %1472 }
 0x391   : > { %v1475_v5 = vpop.eup %1474  ;;  %v888_v6 = vmul.f32 %v1473_v4, %v1465_v48  ;;  %v1549_v48 = vmov 256.0  }
 0x392   : > { %v877_v7 = vpop.xlane.xlu2 %876  ;;  %v886_v8 = vmul.f32 %v1475_v5, %v1467_v49  ;;  %v1359_v5 = vld [vmem:[%s1845_s7 + $0x8] sm:$0xff] }
 0x393   : > { %1476 = vrcp.f32 %v877_v7  ;;  %v892_v9 = vpack.c.bf16 %v888_v6, %v888_v6 }
 0x394   : > { %v890_v10 = vpack.c.bf16 %v886_v8, %v886_v8  ;;  %1478 = vrcp.f32 %v1549_v48 }
 0x395   : > { %v954_v11 = vsel %vm767_vm2, %v892_v9, 0 }
 0x396   : > { %963 = vmatpush.bf16.xpose.msrb.mxu2 %v954_v11  ;;  %v916_v12 = vsel %vm767_vm2, %v890_v10, 0 }
 0x397   : > { %925 = vmatpush.bf16.xpose.msra.mxu3 %v916_v12 }
 0x399   : > { %v1477_v14 = vpop.eup %1476 }
 0x39a   : > { %v535_v15 = vpop.permute.xlu2 %534  ;;  %v887_v16 = vmul.f32 %v1477_v14, %v1469_v53  ;;  %v1479_v49 = vpop.eup %1478 }
 0x39b   : > { %v623_v19 = vadd.f32 %v1725_v17, %v535_v15  ;;  %v1049_v50 = vmul.f32 256.0, %v1479_v49  ;;  %vm1053_vm3 = vweird.f32 %v1479_v49  ;;  %v1358_v15 = vld [vmem:[%s1845_s7] sm:$0xff] }
 0x39c   : > { %v891_v20 = vpack.c.bf16 %v887_v16, %v887_v16  ;;  %v1780_v16 = vld [vmem:[%s1847_s9] sm:$0xf] }
 0x39d   : > { %v632_v22 = vpack.c.bf16 %v623_v19, %v623_v19  ;;  %v1050_v51 = vsub.f32 1.0, %v1049_v50  ;;  %v404_v21 = vunpack.c.l.bf16 %v1780_v16 }
 0x39e   : > { %v935_v23 = vsel %vm767_vm2, %v891_v20, 0  ;;  %v1785_v20 = vld [vmem:[%s1848_s10] sm:$0xf] }
 0x39f   : > { %944 = vmatpush.bf16.xpose.msra.mxu1 %v935_v23  ;;  %1327 = vmatmul.msk.bf16.vlgmr.msrb.gmra.mxu2 %vm767_vm2, %v632_v22  ;;  %v1051_v57 = vmul.f32 %v1479_v49, %v1050_v51  ;;  %v406_v24 = vunpack.c.l.bf16 %v1785_v20 }
 0x3a0   : > { %1030 = vmatpush.bf16.msrb.mxu3 %v1357_v30 }
 0x3a1   : > { %v525_v25 = vpop.permute.xlu1 %524  ;;  %v1052_v61 = vadd.f32 %v1479_v49, %v1051_v57 }
 0x3a2   : > { %v618_v26 = vadd.f32 %v1727_v18, %v525_v25 }
 0x3a3   : > { %v1054_v1 = vsel %vm1053_vm3, %v1479_v49, %v1052_v61 }
 0x3a4   : > { %v630_v28 = vpack.c.bf16 %v618_v26, %v618_v26  ;;  %1031 = vmatpush.bf16.msrb.mxu3 %v1356_v13 }
 0x3a6   : > { %1325 = vmatmul.msk.bf16.vlgmr.msra.gmra.mxu3 %vm767_vm2, %v630_v28  ;;  %1326 = vmatmul.msk.bf16.vlgmr.msra.gmra.mxu1 %vm767_vm2, %v631_v27 }
 0x3a7   : > { %1127 = vmatpush.bf16.msrb.mxu1 %v1359_v5 }
 0x3ab   : > { %1128 = vmatpush.bf16.msrb.mxu1 %v1358_v15 }
 0x408   : > { %v908_v17 = vpop.f32.mrf.mxu2 }
 0x409   : > { %969 = vxpose.xlu0.b32.start [1/4] (short) (narrow) %v908_v17, 8  ;;  %v1103_v17 = vld [vmem:[%s1846_s8] sm:$0x1] }
 0x410   : > { %v910_v29 = vpop.f32.mrf.mxu2 }
 0x411   : > { %v1104_v29 = vunpack.c.l.bf16 %v1103_v17 }
 0x413   : > { %v1105_v30 = vperm.slane %v1104_v29, 0 }
 0x422   : > { %v965_v18 = vpop.f32.mrf.mxu2 }
 0x423   : > { %v946_v31 = vpop.f32.mrf.mxu1 }
 0x429   : > { %v927_v32 = vpop.f32.mrf.mxu3 }
 0x42a   : > { %970 = vxpose.xlu0.b32.cont [2/4] (short) (narrow) %v927_v32, 8  ;;  %v967_v33 = vpop.f32.mrf.mxu2 }
 0x42b   : > { %v948_v34 = vpop.f32.mrf.mxu1 }
 0x431   : > { %v929_v35 = vpop.f32.mrf.mxu3 }
 0x432   : > { %971 = vxpose.xlu0.b32.cont [3/4] (short) (narrow) %v946_v31, 8 }
 0x43a   : > { %972 = vxpose.xlu0.b32.end [4/4] (short) (narrow) %v965_v18, 8 }
 0x4c6   : > { %v985_v36 = vpop.trf.xlu0 }
 0x4c7   : > { %v1001_v37 = vpack.c.bf16 %v985_v36, %v985_v36 }
 0x4c9   : > { %1336 = vmatmul.msk.bf16.vlgmr.msrb.gmra.mxu3 %vm567_vm0, %v1001_v37 }
 0x54c   : > { %v1033_v41 = vpop.f32.mrf.mxu3 }
 0x54d   : > { %v1034_v42 = vadd.f32 %v1033_v41, %v1008_v40 }
 0x54f   : > { %v1037_v43 = vadd.f32 %v1034_v42, %v1669_v2 }
 0x551   : > { %v1038_v44 = vsel %vm567_vm0, %v1037_v43, 0.0  ;;  %v1057_v45 = vmul.f32 %v1037_v43, %v1037_v43 }
 0x552   : > { %1039 = vadd.xlane.f32.xlu1 %v1038_v44 }
 0x553   : > { %v1058_v46 = vsel %vm567_vm0, %v1057_v45, 0.0 }
 0x554   : > { %v1035_v47 = vpop.f32.mrf.mxu3  ;;  %1059 = vadd.xlane.f32.xlu2 %v1058_v46 }
 0x5c5   : > { %v1040_v52 = vpop.xlane.xlu1 %1039 }
 0x5c6   : > { %v1041_v53 = vrot.slane %v1040_v52, 4 }
 0x5c7   : > { %v1060_v54 = vpop.xlane.xlu2 %1059 }
 0x5c8   : > { %v1042_v55 = vadd.f32 %v1041_v53, %v1040_v52  ;;  %v1061_v56 = vrot.slane %v1060_v54, 4 }
 0x5ca   : > { %v1043_v2 = vrot.slane %v1042_v55, 2  ;;  %v1062_v58 = vadd.f32 %v1061_v56, %v1060_v54 }
 0x5cc   : > { %v1063_v59 = vrot.slane %v1062_v58, 2  ;;  %v1044_v60 = vadd.f32 %v1043_v2, %v1042_v55 }
 0x5ce   : > { %v1045_v62 = vrot.slane %v1044_v60, 1  ;;  %v1064_v63 = vadd.f32 %v1063_v59, %v1062_v58 }
 0x5d0   : > { %v1046_v0 = vadd.f32 %v1045_v62, %v1044_v60  ;;  %v1065_v3 = vrot.slane %v1064_v63, 1 }
 0x5d2   : > { %1393 = vpush %v1046_v0  ;;  %v1066_v4 = vadd.f32 %v1065_v3, %v1064_v63 }
 0x5d3   : > { %1395 = vpush %v1054_v1 }
 0x5d4   : > { %1397 = vpush %v1066_v4 }
 0x603   : > { %s1394_s12 = spop %1393 }
 0x604   : > { %s1770_s13 = spop %1395 }
 0x605   : > { %s1056_s30 = smul.f32 %s1770_s13, %s1394_s12  ;;  %s1398_s14 = spop %1397 }
 0x606   : > { %s1076_s26 = smul.f32 %s1398_s14, %s1770_s13 }
 0x607   : > { %s1077_s15 = smul.f32 %s1056_s30, %s1056_s30  ;;  %v1079_v19 = vstv %s1056_s30 }
 0x608   : > { %v1080_v22 = vsub.f32 %v1037_v43, %v1079_v19 }
 0x609   : > { %s1078_s16 = ssub.f32 %s1076_s26, %s1077_s15 }
 0x60b   : > { %s1081_s22 = sadd.f32 1e-05, %s1078_s16 }
 0x60d   : > { %v1082_v6 = vstv %s1081_s22 }
 0x60e   : > { %1480 = vrsqrt.f32 %v1082_v6  ;;  %vm1089_vm5 = vweird.f32 %v1082_v6 }
 0x614   : > { %v1481_v7 = vpop.eup %1480 }
 0x615   : > { %v1084_v8 = vmul.f32 %v1481_v7, %v1082_v6  ;;  %vm1090_vm4 = vweird.f32 %v1481_v7 }
 0x616   : > { %vm1091_vm6 = vmor %vm1089_vm5, %vm1090_vm4 }
 0x617   : > { %v1085_v9 = vmul.f32 %v1481_v7, %v1084_v8 }
 0x619   : > { %v1086_v10 = vmul.f32 0.5, %v1085_v9 }
 0x61b   : > { %v1087_v11 = vsub.f32 1.5, %v1086_v10 }
 0x61d   : > { %v1088_v12 = vmul.f32 %v1481_v7, %v1087_v11 }
 0x61f   : > { %v1092_v14 = vsel %vm1091_vm6, %v1481_v7, %v1088_v12 }
 0x620   : > { %1399 = vpush %v1092_v14 }
 0x651   : > { %s1400_s15 = spop %1399 }
 0x652   : > { %v1094_v23 = vstv %s1400_s15  ;;  %s388_s15 = sand.u32 1, %s1538_s18  }
 0x653   : > { %v1095_v25 = vmul.f32 %v1094_v23, %v1080_v22  ;;  %s1287_s30 = sshll.u32 %s388_s15, 3 }
 0x655   : > { %v1096_v26 = vmul.f32 %v1095_v25, %v404_v21 }
 0x657   : > { %v1097_v27 = vadd.f32 %v1096_v26, %v406_v24 }
 0x659   : > { %v1098_v28 = vpack.c.bf16 %v1097_v27, %v1097_v27 }
 0x65b   : > { %1345 = vmatmul.msk.bf16.vlgmr.msrb.gmra.mxu1 %vm567_vm0, %v1098_v28 }
 0x6d8   : > { %v1130_v13 = vpop.f32.mrf.mxu1 }
 0x6d9   : > { %v1131_v18 = vadd.f32 %v1130_v13, %v1105_v30 }
 0x6db   : > { %v1134_v31 = vadd.f32 %v1131_v18, %v1097_v27 }
 0x6dd   : > { %v1135_v32 = vsel %vm567_vm0, %v1134_v31, 0.0  ;;  %v1154_v33 = vmul.f32 %v1134_v31, %v1134_v31 }
 0x6de   : > { %1136 = vadd.xlane.f32.xlu1 %v1135_v32 }
 0x6df   : > { %v1155_v34 = vsel %vm567_vm0, %v1154_v33, 0.0 }
 0x6e0   : > { %v1132_v35 = vpop.f32.mrf.mxu1  ;;  %1156 = vadd.xlane.f32.xlu2 %v1155_v34 }
 0x751   : > { %v1137_v36 = vpop.xlane.xlu1 %1136 }
 0x752   : > { %v1138_v37 = vrot.slane %v1137_v36, 4 }
 0x753   : > { %v1157_v38 = vpop.xlane.xlu2 %1156 }
 0x754   : > { %v1139_v39 = vadd.f32 %v1138_v37, %v1137_v36  ;;  %v1158_v40 = vrot.slane %v1157_v38, 4 }
 0x756   : > { %v1140_v41 = vrot.slane %v1139_v39, 2  ;;  %v1159_v42 = vadd.f32 %v1158_v40, %v1157_v38 }
 0x758   : > { %v1141_v43 = vadd.f32 %v1140_v41, %v1139_v39  ;;  %v1160_v44 = vrot.slane %v1159_v42, 2 }
 0x75a   : > { %v1161_v45 = vadd.f32 %v1160_v44, %v1159_v42  ;;  %v1142_v46 = vrot.slane %v1141_v43, 1 }
 0x75c   : > { %v1143_v47 = vadd.f32 %v1142_v46, %v1141_v43  ;;  %v1162_v48 = vrot.slane %v1161_v45, 1 }
 0x75e   : > { %1401 = vpush %v1143_v47  ;;  %v1163_v49 = vadd.f32 %v1162_v48, %v1161_v45 }
 0x760   : > { %1403 = vpush %v1163_v49 }
 0x78f   : > { %s1402_s22 = spop %1401 }
 0x790   : > { %s1153_s24 = smul.f32 %s1402_s22, %s1770_s13  ;;  %s1504_s22 = scalar_lea.hbm %s1849_s11, 16 }
 0x791   : > { %s1404_s25 = spop %1403 }
 0x792   : > { %s1174_s29 = smul.f32 %s1153_s24, %s1153_s24  ;;  %v1176_v2 = vstv %s1153_s24 }
 0x793   : > { %s1173_s12 = smul.f32 %s1404_s25, %s1770_s13  ;;  %s1347_s13 = sshll.u32 %s1631_s21, 3  ;;  %v1177_v58 = vsub.f32 %v1134_v31, %v1176_v2 }
 0x794   : > { %s1197_s21 = scalar_lea.sflag [#allocation3], %s388_s15 }
 0x795   : > { %s1175_s14 = ssub.f32 %s1173_s12, %s1174_s29  ;;  %s1207_s29 = scalar_lea.hbm %s1849_s11, %s1347_s13 }
 0x796   : > { %s390_s12 = scalar_lea.vmem [#allocation2], %s1287_s30 }
 0x797   : > { %s1178_s26 = sadd.f32 1e-05, %s1175_s14  ;;  %s1209_s14 = sshll.u32 %s390_s12, 4  ;;  %s1210_s14 = int_to_ptr.vmem [resolvable:$true] %s1209_s14 }
 0x799   : > { %v1179_v50 = vstv %s1178_s26  ;;  %s1211_s26 = sshll.u32 %s1207_s29, 4  ;;  %s1212_s26 = int_to_ptr.hbm [resolvable:$true] %s1211_s26 }
 0x79a   : > { %1482 = vrsqrt.f32 %v1179_v50  ;;  %vm1186_vm8 = vweird.f32 %v1179_v50  ;;  %s1498_s24 = sshra.s32 %s1212_s26, 4  ;;  %s1499_s24 = int_to_ptr.hbm [resolvable:$true] %s1498_s24 }
 0x79b   : > { %s1500_s13 = scalar_lea.hbm %s1499_s24, 8  ;;  %p1505_p0 = scmp.lt.s32.totalorder %s1499_s24, %s1849_s11 }
 0x79c   : > { %p1501_p11 = scmp.ne.s32.totalorder %s1499_s24, %s1500_s13  ;;  %p1506_p1 = scmp.lt.s32.totalorder %s1504_s22, %s1500_s13 }
 0x79e   : > { %p1502_p12 = pnand %p1501_p11, %p1648_p5  ;;  %p1507_p2 = por %p1506_p1, %p1505_p0 }
 0x7a0   : > { %v1483_v51 = vpop.eup %1482  ;;  %p1503_p13 = pneg %p1502_p12 }
 0x7a1   : > { %v1181_v52 = vmul.f32 %v1483_v51, %v1179_v50  ;;  %vm1187_vm7 = vweird.f32 %v1483_v51 }
 0x7a2   : > { %vm1188_vm9 = vmor %vm1186_vm8, %vm1187_vm7  ;;  %p1508_p3 = pnand %p1507_p2, %p1503_p13 }
 0x7a3   : > { %v1182_v53 = vmul.f32 %v1483_v51, %v1181_v52 }
 0x7a5   : > { %v1183_v54 = vmul.f32 0.5, %v1182_v53 }
 0x7a7   : > { %v1184_v55 = vsub.f32 1.5, %v1183_v54 }
 0x7a9   : > { %v1185_v56 = vmul.f32 %v1483_v51, %v1184_v55 }
 0x7ab   : > { %v1189_v57 = vsel %vm1188_vm9, %v1483_v51, %v1185_v56 }
 0x7ac   : > { %1405 = vpush %v1189_v57 }
 0x7dd   : > { %s1406_s16 = spop %1405 }
 0x7de   : > { %v1191_v59 = vstv %s1406_s16 }
 0x7df   : > { %v1192_v60 = vmul.f32 %v1191_v59, %v1177_v58 }
 0x7e1   : > { %v1193_v61 = vmul.f32 %v1192_v60, %v404_v21 }
 0x7e3   : > { %v1194_v62 = vadd.f32 %v1193_v61, %v406_v24 }
 0x7e5   : > { %1195 = vst.msk [vmem:[%s390_s12] sm:$0xff] %vm567_vm0, %v1194_v62 }
 0x7e6   : > { %1511 = shalt.err (!%p1508_p3)
}
 0x7e7   : > { %1407 = dma.vmem_to_hbm [thread:$0]  (%p1648_p5), %s1210_s14, 128, %s1212_s26, %s1197_s21  }
 0x7e8 PF: > { %p1413_p4 = scmp.ge.s32.totalorder %s1546_s20, 2  ;;  %s1223_s15 = sand.u32 1, %s1534_s17  }
 0x7e9   : > { %s1224_s12 = scalar_lea.sflag [#allocation3], %s1223_s15 }
 0x7ea   : > { %p1410_p7 = pnand %p1413_p4, %p1652_p6 }
 0x7ec   : > { %p1411_p8 = pneg %p1410_p7 }
 0x7ee   : > { %1529 = dma.done.wait (%p1411_p8), %s1224_s12, 128  }
 0x7ef   : > { %1531 = vsyncadd (%p1411_p8), %s1224_s12, 4294967168  ;;  %s1853_s24 = sld [smem:[#allocation5_spill]]  ;;  %p21_p9 = scmp.ge.s32.totalorder %s1635_s23, 4  }
 0x7f0   : > { %s1854_s17 = smov %s1538_s18  ;;  %s1855_s18 = smov %s1542_s19 }
 0x7f1   : > { %s1857_s20 = smov %s1635_s23  ;;  %23 = sbr.rel (!%p21_p9) target bundleno = 3 (0x3), region = 102 }
 0x7f5   : > { %s1856_s19 = smov %s1853_s24 }
 0x7f6   :  { %1230 = vsyncpa [#allocation3], 1 }
 0x7f7   :  { %1232 = vsyncpa [#allocation3 + $0x1], 1 }

// kernel: tpu_custom_call.1
= control target key start
LH: loop header
LB: loop body
LE: loop exit
PB: predicated region body
PF: predicated region fallthrough
CT: control target
= control target key end

     0   :  { %16 = vsyncpa [#allocation3], 0  ;;  %s1838_s0 = inlined_call_operand.vmem [shape: f32[2,8,32], index: 0, kind: input, shape index: {}]   ;;  %s1839_s1 = inlined_call_operand.vmem [shape: f32[8,32], index: 1, kind: input, shape index: {}]   ;;  %s1840_s2 = inlined_call_operand.vmem [shape: bf16[2,8,8], index: 2, kind: input, shape index: {}]   ;;  %s1841_s3 = inlined_call_operand.vmem [shape: bf16[96,32], index: 3, kind: input, shape index: {}]   ;;  %s1842_s4 = inlined_call_operand.vmem [shape: bf16[96,1], index: 4, kind: input, shape index: {}]   ;;  %s1843_s5 = inlined_call_operand.vmem [shape: bf16[32,32], index: 5, kind: input, shape index: {}]   ;;  %s1844_s6 = inlined_call_operand.vmem [shape: bf16[1,32], index: 6, kind: input, shape index: {}]   ;;  %s1845_s7 = inlined_call_operand.vmem [shape: bf16[32,32], index: 7, kind: input, shape index: {}]   ;;  %s1846_s8 = inlined_call_operand.vmem [shape: bf16[1,32], index: 8, kind: input, shape index: {}]   ;;  %s1847_s9 = inlined_call_operand.vmem [shape: bf16[8,32], index: 9, kind: input, shape index: {}]   ;;  %s1848_s10 = inlined_call_operand.vmem [shape: bf16[8,32], index: 10, kind: input, shape index: {}]   ;;  %s1849_s11 = inlined_call_operand.hbm [shape: f32[2,8,32], index: 11, kind: output, shape index: {}]  }
   0x1   :  { %18 = vsyncpa [#allocation3 + $0x1], 0  ;;  %s1610_s17 = smov 0   ;;  %s1612_s18 = smov 0  }
   0x2   :  { %s1614_s19 = smov 0   ;;  %s1616_s20 = smov 0  }
   0x3 LB: > { %s1631_s21 = sadd.s32 4294967295, %s1546_s20   ;;  %s1283_s22 = sadd.s32 4294967294, %s1546_s20   ;;  %s1546_s20 = sphi %s1616_s20, %s1857_s20   ;;  %s1542_s19 = sphi %s1614_s19, %s1856_s19   ;;  %s1538_s18 = sphi %s1612_s18, %s1855_s18   ;;  %s1534_s17 = sphi %s1610_s17, %s1854_s17  }
   0x4   : > { %s1635_s23 = sadd.s32 1, %s1546_s20   ;;  %s272_s24 = sadd.s32 1, %s1542_s19 }
   0x5   : > { %s269_s25 = ssub.s32 %s1546_s20, %s1635_s23  ;;  %p282_p0 = scmp.ne.s32.totalorder %s1542_s19, %s1538_s18 }
   0x6   : > { %p270_p1 = scmp.eq.s32.totalorder %s269_s25, 0  ;;  %p283_p2 = scmp.eq.s32.totalorder %s1631_s21, 1 }
   0x7   : > { %p288_p3 = scmp.ne.s32.totalorder %s1538_s18, %s1534_s17  ;;  %p289_p4 = scmp.eq.s32.totalorder %s1283_s22, 1 }
   0x8   : > { %s1646_s26 = scalar_select %p270_p1, %s1542_s19, %s272_s24  }
   0x9   : > { %p1648_p5 = por %p283_p2, %p282_p0  ;;  %p1652_p6 = por %p289_p4, %p288_p3 }
   0xa   : > { %1850 = sst [smem:[#allocation5_spill]] %s1646_s26  ;;  %p1286_p7 = scmp.ge.s32.totalorder %s1546_s20, 1 }
   0xb   : > { %p348_p8 = scmp.lt.s32.totalorder %s1546_s20, 3 }
   0xd   : > { %p349_p9 = pnand %p1286_p7, %p348_p8 }
   0xe   : > { %p391_p10 = scmp.lt.s32.totalorder (!%p349_p9), %s1631_s21, 1 }
   0xf   : > { %352 = sbr.rel (%p349_p9) target bundleno = 2024 (0x7e8), region = 64 }
  0x14   : > { %s1660_s29 = scalar_select %p391_p10, %s1631_s21, 1  ;;  %v401_v0 = vld [vmem:[%s1839_s1] sm:$0xff]  ;;  %v1384_v7 = vld [vmem:[%s1842_s4 + $0x8] sm:$0xff]   ;;  %v1385_v8 = vld [vmem:[%s1842_s4 + $0x10] sm:$0xff]   ;;  %v1548_v9 = vmov 0   ;;  %vm567_vm0 = vcmask 261120  }
  0x15   : > { %v1361_v4 = vld [vmem:[%s1842_s4] sm:$0xff]   ;;  %1450 = vset.pattern.permute.xlu1 %v1548_v9  ;;  %v1366_v10 = vunpack.c.l.bf16 %v1384_v7  ;;  %v1370_v11 = vunpack.c.l.bf16 %v1385_v8  ;;  %1456 = vset.pattern.permute.xlu2 %v1548_v9  ;;  %v1386_v15 = vld [vmem:[%s1842_s4 + $0x18] sm:$0xff]   ;;  %v1351_v21 = vld [vmem:[%s1841_s3 + $0x8] sm:$0xff]  ;;  %v1367_v22 = vunpack.c.h.bf16 %v1384_v7  ;;  %v1371_v23 = vunpack.c.h.bf16 %v1385_v8 }
  0x16   : > { %s1288_s30 = sshll.u32 %s1660_s29, 3  ;;  %v1363_v5 = vunpack.c.h.bf16 %v1361_v4  ;;  %v1362_v6 = vunpack.c.l.bf16 %v1361_v4  ;;  %v1375_v16 = vunpack.c.h.bf16 %v1386_v15  ;;  %v1350_v20 = vld [vmem:[%s1841_s3] sm:$0xff]  ;;  %v1374_v25 = vunpack.c.l.bf16 %v1386_v15  ;;  %v1352_v26 = vld [vmem:[%s1841_s3 + $0x10] sm:$0xff]  ;;  %v1353_v27 = vld [vmem:[%s1841_s3 + $0x18] sm:$0xff] }
  0x17   : > { %s394_s16 = scalar_lea.vmem %s1838_s0, %s1288_s30  ;;  %v1451_v13 = vpack.i.bf16 %v1366_v10, %v1370_v11  ;;  %v1457_v24 = vpack.i.bf16 %v1371_v23, %v1367_v22  ;;  %v1354_v42 = vld [vmem:[%s1841_s3 + $0x20] sm:$0xff]  ;;  %vm771_vm1 = vcmask 1043456   ;;  %v1355_v63 = vld [vmem:[%s1841_s3 + $0x28] sm:$0xff]  ;;  %vm767_vm2 = vcmask 64512  }
  0x18   : > { %v400_v1 = vld [vmem:[%s394_s16] sm:$0xff]  ;;  %484 = vperm.xlu1 %1450, %v1363_v5   ;;  %s1289_s16 = sshll.u32 %s1660_s29, 2 }
  0x19   : > { %v1669_v2 = vadd.f32 %v401_v0, %v400_v1  ;;  %1458 = vperm.xlu2 %1456, %v1457_v24   ;;  %s398_s25 = scalar_lea.vmem %s1840_s2, %s1289_s16 }
  0x1b   : > { %407 = vxpose.xlu0.b32.start.end [1/1] (short) (narrow) %v1669_v2, 32 }
  0x20   : > { %1452 = vperm.xlu1 %1450, %v1451_v13  }
  0x21   : > { %509 = vperm.xlu2 %1456, %v1374_v25  }
  0x28   : > { %514 = vperm.xlu1 %1450, %v1375_v16  }
  0x73   : > { %v1459_v38 = vpop.permute.xlu2 %1458 }
  0x74   : > { %v1460_v39 = vunpack.i.l.bf16 %v1459_v38  ;;  %v1461_v48 = vunpack.i.h.bf16 %v1459_v38 }
  0x7b   : > { %v510_v53 = vpop.permute.xlu2 %509 }
  0x82   : > { %1449 = vset.pattern.permute.xlu0 %v1548_v9  ;;  %v765_v9 = vld [vmem:[%s398_s25] sm:$0xf] }
  0x83   : > { %v766_v10 = vunpack.c.l.bf16 %v765_v9 }
  0x8a   : > { %v485_v31 = vpop.permute.xlu1 %484 }
  0x92   : > { %v1453_v34 = vpop.permute.xlu1 %1452 }
  0x93   : > { %v1455_v35 = vunpack.i.h.bf16 %v1453_v34  ;;  %v1454_v43 = vunpack.i.l.bf16 %v1453_v34 }
  0x9a   : > { %v515_v58 = vpop.permute.xlu1 %514 }
  0xa1   : > { %479 = vperm.xlu0 %1449, %v1362_v6  }
  0xbf   : > { %v423_v3 = vpop.trf.xlu0 }
  0xc7   : > { %v424_v12 = vpop.trf.xlu0 }
  0xc8   : > { %v439_v19 = vpack.c.bf16 %v424_v12, %v423_v3 }
  0xcf   : > { %v425_v14 = vpop.trf.xlu0 }
  0xd7   : > { %v426_v17 = vpop.trf.xlu0 }
  0xd8   : > { %v440_v18 = vpack.c.bf16 %v426_v17, %v425_v14 }
  0xda   : > { %592 = vmatpush.bf16.msra.mxu0 %v440_v18  ;;  %1389 = vmatpush.bf16.msra.mxu2 %v440_v18 }
  0xdb   : > { %1390 = vmatpush.bf16.msra.mxu3 %v440_v18 }
  0xde   : > { %593 = vmatpush.bf16.msra.mxu0 %v439_v19  ;;  %1391 = vmatpush.bf16.msra.mxu2 %v439_v19 }
  0xdf   : > { %1392 = vmatpush.bf16.msra.mxu3 %v439_v19 }
  0xe1   : > { %1314 = vmatmul.msk.bf16.vlgmr.msra.gmra.mxu0 %vm567_vm0, %v1350_v20  ;;  %1318 = vmatmul.msk.bf16.vlgmr.msra.gmra.mxu2 %vm567_vm0, %v1354_v42 }
  0xe2   : > { %1319 = vmatmul.msk.bf16.vlgmr.msra.gmra.mxu3 %vm567_vm0, %v1355_v63 }
  0xf1   : > { %1315 = vmatmul.msk.bf16.gmra.mxu0 %vm567_vm0, %v1351_v21 }
 0x101   : > { %1316 = vmatmul.msk.bf16.gmra.mxu0 %vm567_vm0, %v1352_v26 }
 0x111   : > { %1317 = vmatmul.msk.bf16.gmra.mxu0 %vm567_vm0, %v1353_v27 }
 0x113   : > { %v480_v28 = vpop.permute.xlu0 %479 }
 0x15e   : > { %v595_v29 = vpop.f32.mrf.mxu0 }
 0x15f   : > { %v596_v30 = vadd.f32 %v595_v29, %v480_v28 }
 0x161   : > { %633 = vxpose.xlu2.b32.start.end [1/1] (short) (narrow) %v596_v30, 8 }
 0x164   : > { %v1723_v15 = vpop.f32.mrf.mxu2 }
 0x165   : > { %v1720_v13 = vpop.f32.mrf.mxu3 }
 0x166   : > { %v597_v32 = vpop.f32.mrf.mxu0 }
 0x167   : > { %v598_v33 = vadd.f32 %v597_v32, %v485_v31  ;;  %v1387_v31 = vld [vmem:[%s1842_s4 + $0x20] sm:$0xff]  }
 0x168   : > { %v1378_v32 = vunpack.c.l.bf16 %v1387_v31 }
 0x169   : > { %665 = vxpose.xlu1.b32.start.end [1/1] (short) (narrow) %v598_v33, 8  ;;  %v1388_v33 = vld [vmem:[%s1842_s4 + $0x28] sm:$0xff]  }
 0x16a   : > { %v1382_v34 = vunpack.c.l.bf16 %v1388_v33 }
 0x16c   : > { %v1727_v18 = vpop.f32.mrf.mxu2 }
 0x16d   : > { %v1725_v17 = vpop.f32.mrf.mxu3 }
 0x16e   : > { %v600_v36 = vpop.f32.mrf.mxu0 }
 0x16f   : > { %v601_v37 = vadd.f32 %v1455_v35, %v600_v36 }
 0x171   : > { %697 = vxpose.xlu2.b32.start.end [1/1] (short) (narrow) %v601_v37, 8 }
 0x176   : > { %v602_v40 = vpop.f32.mrf.mxu0 }
 0x177   : > { %v603_v41 = vadd.f32 %v1460_v39, %v602_v40 }
 0x179   : > { %729 = vxpose.xlu2.b32.start.end [1/1] (short) (narrow) %v603_v41, 8 }
 0x17e   : > { %v605_v44 = vpop.f32.mrf.mxu0 }
 0x17f   : > { %v606_v45 = vadd.f32 %v1454_v43, %v605_v44 }
 0x181   : > { %v625_v46 = vpack.c.bf16 %v606_v45, %v606_v45 }
 0x183   : > { %v773_v47 = vsel %vm771_vm1, %v625_v46, 0 }
 0x184   : > { %782 = vmatpush.bf16.msra.mxu1 %v773_v47 }
 0x186   : > { %v607_v49 = vpop.f32.mrf.mxu0 }
 0x187   : > { %v608_v50 = vadd.f32 %v1461_v48, %v607_v49 }
 0x189   : > { %v626_v51 = vpack.c.bf16 %v608_v50, %v608_v50 }
 0x18b   : > { %v792_v52 = vsel %vm771_vm1, %v626_v51, 0 }
 0x18c   : > { %801 = vmatpush.bf16.msrb.mxu2 %v792_v52 }
 0x18e   : > { %v610_v54 = vpop.f32.mrf.mxu0 }
 0x18f   : > { %v611_v55 = vadd.f32 %v610_v54, %v510_v53 }
 0x191   : > { %v627_v56 = vpack.c.bf16 %v611_v55, %v611_v55  ;;  %v1379_v55 = vunpack.c.h.bf16 %v1387_v31 }
 0x193   : > { %v811_v57 = vsel %vm771_vm1, %v627_v56, 0  ;;  %v1383_v56 = vunpack.c.h.bf16 %v1388_v33 }
 0x194   : > { %820 = vmatpush.bf16.msrb.mxu3 %v811_v57 }
 0x196   : > { %v612_v59 = vpop.f32.mrf.mxu0 }
 0x197   : > { %v613_v60 = vadd.f32 %v612_v59, %v515_v58 }
 0x199   : > { %v628_v61 = vpack.c.bf16 %v613_v60, %v613_v60 }
 0x19b   : > { %v830_v62 = vsel %vm771_vm1, %v628_v61, 0 }
 0x19c   : > { %839 = vmatpush.bf16.msrb.mxu1 %v830_v62 }
 0x1fa   : > { %v649_v0 = vpop.trf.xlu2 }
 0x1fb   : > { %v761_v1 = vpack.c.bf16 %v649_v0, %v649_v0 }
 0x1fd   : > { %1320 = vmatmul.msk.bf16.vlgmr.msra.gmra.mxu1 %vm767_vm2, %v761_v1 }
 0x20a   : > { %v713_v3 = vpop.trf.xlu2 }
 0x20b   : > { %v763_v4 = vpack.c.bf16 %v713_v3, %v713_v3 }
 0x20d   : > { %v681_v5 = vpop.trf.xlu1  ;;  %1322 = vmatmul.msk.bf16.vlgmr.msrb.gmra.mxu3 %vm767_vm2, %v763_v4 }
 0x20e   : > { %v762_v6 = vpack.c.bf16 %v681_v5, %v681_v5 }
 0x210   : > { %1321 = vmatmul.msk.bf16.vlgmr.msrb.gmra.mxu2 %vm767_vm2, %v762_v6 }
 0x212   : > { %v745_v7 = vpop.trf.xlu2 }
 0x213   : > { %v764_v8 = vpack.c.bf16 %v745_v7, %v745_v7 }
 0x215   : > { %1323 = vmatmul.msk.bf16.vlgmr.msrb.gmra.mxu1 %vm767_vm2, %v764_v8 }
 0x27a   : > { %v784_v11 = vpop.f32.mrf.mxu1 }
 0x27b   : > { %v785_v12 = vadd.f32 %v784_v11, %v766_v10 }
 0x27d   : > { %v845_v14 = vsel %vm767_vm2, %v785_v12, -inf }
 0x27e   : > { %846 = vmax.xlane.f32.xlu2 %v845_v14 }
 0x282   : > { %v786_v16 = vpop.f32.mrf.mxu1 }
 0x290   : > { %v822_v19 = vpop.f32.mrf.mxu3 }
 0x291   : > { %v823_v27 = vadd.f32 %v822_v19, %v766_v10 }
 0x292   : > { %v841_v20 = vpop.f32.mrf.mxu1 }
 0x293   : > { %v842_v21 = vadd.f32 %v841_v20, %v766_v10  ;;  %v803_v22 = vpop.f32.mrf.mxu2  ;;  %v851_v30 = vsel %vm767_vm2, %v823_v27, -inf }
 0x294   : > { %v804_v23 = vadd.f32 %v803_v22, %v766_v10 }
 0x295   : > { %v854_v24 = vsel %vm767_vm2, %v842_v21, -inf }
 0x296   : > { %855 = vmax.xlane.f32.xlu0 %v854_v24  ;;  %v848_v25 = vsel %vm767_vm2, %v804_v23, -inf }
 0x297   : > { %849 = vmax.xlane.f32.xlu1 %v848_v25 }
 0x298   : > { %v824_v26 = vpop.f32.mrf.mxu3 }
 0x29a   : > { %v843_v28 = vpop.f32.mrf.mxu1 }
 0x29b   : > { %v805_v29 = vpop.f32.mrf.mxu2 }
 0x29f   : > { %852 = vmax.xlane.f32.xlu1 %v851_v30  ;;  %v1357_v30 = vld [vmem:[%s1843_s5 + $0x8] sm:$0xff] }
 0x2aa   : > { %519 = vperm.xlu0 %1449, %v1378_v32  }
 0x2b2   : > { %529 = vperm.xlu0 %1449, %v1382_v34  }
 0x2f1   : > { %v847_v35 = vpop.xlane.xlu2 %846 }
 0x2f2   : > { %v857_v36 = vsub.f32 %v785_v12, %v847_v35 }
 0x2f4   : > { %v861_v37 = vmul.f32 1.442695, %v857_v36 }
 0x2f6   : > { %1462 = vpow2.f32 %v861_v37 }
 0x2fc   : > { %v1463_v38 = vpop.eup %1462 }
 0x2fd   : > { %v869_v39 = vsel %vm767_vm2, %v1463_v38, 0.0 }
 0x2fe   : > { %870 = vadd.xlane.f32.xlu1 %v869_v39 }
 0x309   : > { %v856_v40 = vpop.xlane.xlu0 %855 }
 0x30a   : > { %v860_v41 = vsub.f32 %v842_v21, %v856_v40  ;;  %v850_v42 = vpop.xlane.xlu1 %849 }
 0x30b   : > { %v858_v43 = vsub.f32 %v804_v23, %v850_v42 }
 0x30c   : > { %v867_v44 = vmul.f32 1.442695, %v860_v41 }
 0x30d   : > { %v863_v45 = vmul.f32 1.442695, %v858_v43 }
 0x30e   : > { %1464 = vpow2.f32 %v867_v44 }
 0x30f   : > { %1466 = vpow2.f32 %v863_v45 }
 0x312   : > { %v853_v46 = vpop.xlane.xlu1 %852 }
 0x313   : > { %v859_v47 = vsub.f32 %v823_v27, %v853_v46 }
 0x314   : > { %v1465_v48 = vpop.eup %1464 }
 0x315   : > { %v1467_v49 = vpop.eup %1466  ;;  %v865_v50 = vmul.f32 1.442695, %v859_v47  ;;  %v878_v51 = vsel %vm767_vm2, %v1465_v48, 0.0 }
 0x316   : > { %879 = vadd.xlane.f32.xlu1 %v878_v51  ;;  %v872_v52 = vsel %vm767_vm2, %v1467_v49, 0.0 }
 0x317   : > { %1468 = vpow2.f32 %v865_v50  ;;  %873 = vadd.xlane.f32.xlu2 %v872_v52 }
 0x31c   : > { %v520_v61 = vpop.permute.xlu0 %519 }
 0x31d   : > { %v1469_v53 = vpop.eup %1468  ;;  %v616_v63 = vadd.f32 %v1723_v15, %v520_v61 }
 0x31e   : > { %v875_v54 = vsel %vm767_vm2, %v1469_v53, 0.0 }
 0x31f   : > { %876 = vadd.xlane.f32.xlu2 %v875_v54  ;;  %v629_v0 = vpack.c.bf16 %v616_v63, %v616_v63 }
 0x324   : > { %v530_v21 = vpop.permute.xlu0 %529 }
 0x325   : > { %v621_v24 = vadd.f32 %v1720_v13, %v530_v21  ;;  %v1356_v13 = vld [vmem:[%s1843_s5] sm:$0xff] }
 0x327   : > { %v631_v27 = vpack.c.bf16 %v621_v24, %v621_v24 }
 0x32f   : > { %524 = vperm.xlu1 %1450, %v1379_v55  }
 0x337   : > { %534 = vperm.xlu2 %1456, %v1383_v56  }
 0x371   : > { %v871_v57 = vpop.xlane.xlu1 %870 }
 0x372   : > { %1470 = vrcp.f32 %v871_v57 }
 0x378   : > { %v1471_v58 = vpop.eup %1470 }
 0x379   : > { %v885_v59 = vmul.f32 %v1471_v58, %v1463_v38  ;;  %v1006_v38 = vld [vmem:[%s1844_s6] sm:$0x1] }
 0x37a   : > { %v1007_v39 = vunpack.c.l.bf16 %v1006_v38 }
 0x37b   : > { %v889_v60 = vpack.c.bf16 %v885_v59, %v885_v59 }
 0x37c   : > { %v1008_v40 = vperm.slane %v1007_v39, 0 }
 0x37d   : > { %v897_v62 = vsel %vm767_vm2, %v889_v60, 0 }
 0x37e   : > { %906 = vmatpush.bf16.xpose.msra.mxu2 %v897_v62 }
 0x385   : > { %1324 = vmatmul.msk.bf16.vlgmr.msra.gmra.mxu2 %vm767_vm2, %v629_v0 }
 0x389   : > { %v880_v1 = vpop.xlane.xlu1 %879 }
 0x38a   : > { %1472 = vrcp.f32 %v880_v1  ;;  %v874_v3 = vpop.xlane.xlu2 %873 }
 0x38b   : > { %1474 = vrcp.f32 %v874_v3 }
 0x390   : > { %v1473_v4 = vpop.eup %1472 }
 0x391   : > { %v1475_v5 = vpop.eup %1474  ;;  %v888_v6 = vmul.f32 %v1473_v4, %v1465_v48  ;;  %v1549_v48 = vmov 256.0  }
 0x392   : > { %v877_v7 = vpop.xlane.xlu2 %876  ;;  %v886_v8 = vmul.f32 %v1475_v5, %v1467_v49  ;;  %v1359_v5 = vld [vmem:[%s1845_s7 + $0x8] sm:$0xff] }
 0x393   : > { %1476 = vrcp.f32 %v877_v7  ;;  %v892_v9 = vpack.c.bf16 %v888_v6, %v888_v6 }
 0x394   : > { %v890_v10 = vpack.c.bf16 %v886_v8, %v886_v8  ;;  %1478 = vrcp.f32 %v1549_v48 }
 0x395   : > { %v954_v11 = vsel %vm767_vm2, %v892_v9, 0 }
 0x396   : > { %963 = vmatpush.bf16.xpose.msrb.mxu2 %v954_v11  ;;  %v916_v12 = vsel %vm767_vm2, %v890_v10, 0 }
 0x397   : > { %925 = vmatpush.bf16.xpose.msra.mxu3 %v916_v12 }
 0x399   : > { %v1477_v14 = vpop.eup %1476 }
 0x39a   : > { %v535_v15 = vpop.permute.xlu2 %534  ;;  %v887_v16 = vmul.f32 %v1477_v14, %v1469_v53  ;;  %v1479_v49 = vpop.eup %1478 }
 0x39b   : > { %v623_v19 = vadd.f32 %v1725_v17, %v535_v15  ;;  %v1049_v50 = vmul.f32 256.0, %v1479_v49  ;;  %vm1053_vm3 = vweird.f32 %v1479_v49  ;;  %v1358_v15 = vld [vmem:[%s1845_s7] sm:$0xff] }
 0x39c   : > { %v891_v20 = vpack.c.bf16 %v887_v16, %v887_v16  ;;  %v1780_v16 = vld [vmem:[%s1847_s9] sm:$0xf] }
 0x39d   : > { %v632_v22 = vpack.c.bf16 %v623_v19, %v623_v19  ;;  %v1050_v51 = vsub.f32 1.0, %v1049_v50  ;;  %v404_v21 = vunpack.c.l.bf16 %v1780_v16 }
 0x39e   : > { %v935_v23 = vsel %vm767_vm2, %v891_v20, 0  ;;  %v1785_v20 = vld [vmem:[%s1848_s10] sm:$0xf] }
 0x39f   : > { %944 = vmatpush.bf16.xpose.msra.mxu1 %v935_v23  ;;  %1327 = vmatmul.msk.bf16.vlgmr.msrb.gmra.mxu2 %vm767_vm2, %v632_v22  ;;  %v1051_v57 = vmul.f32 %v1479_v49, %v1050_v51  ;;  %v406_v24 = vunpack.c.l.bf16 %v1785_v20 }
 0x3a0   : > { %1030 = vmatpush.bf16.msrb.mxu3 %v1357_v30 }
 0x3a1   : > { %v525_v25 = vpop.permute.xlu1 %524  ;;  %v1052_v61 = vadd.f32 %v1479_v49, %v1051_v57 }
 0x3a2   : > { %v618_v26 = vadd.f32 %v1727_v18, %v525_v25 }
 0x3a3   : > { %v1054_v1 = vsel %vm1053_vm3, %v1479_v49, %v1052_v61 }
 0x3a4   : > { %v630_v28 = vpack.c.bf16 %v618_v26, %v618_v26  ;;  %1031 = vmatpush.bf16.msrb.mxu3 %v1356_v13 }
 0x3a6   : > { %1325 = vmatmul.msk.bf16.vlgmr.msra.gmra.mxu3 %vm767_vm2, %v630_v28  ;;  %1326 = vmatmul.msk.bf16.vlgmr.msra.gmra.mxu1 %vm767_vm2, %v631_v27 }
 0x3a7   : > { %1127 = vmatpush.bf16.msrb.mxu1 %v1359_v5 }
 0x3ab   : > { %1128 = vmatpush.bf16.msrb.mxu1 %v1358_v15 }
 0x408   : > { %v908_v17 = vpop.f32.mrf.mxu2 }
 0x409   : > { %969 = vxpose.xlu0.b32.start [1/4] (short) (narrow) %v908_v17, 8  ;;  %v1103_v17 = vld [vmem:[%s1846_s8] sm:$0x1] }
 0x410   : > { %v910_v29 = vpop.f32.mrf.mxu2 }
 0x411   : > { %v1104_v29 = vunpack.c.l.bf16 %v1103_v17 }
 0x413   : > { %v1105_v30 = vperm.slane %v1104_v29, 0 }
 0x422   : > { %v965_v18 = vpop.f32.mrf.mxu2 }
 0x423   : > { %v946_v31 = vpop.f32.mrf.mxu1 }
 0x429   : > { %v927_v32 = vpop.f32.mrf.mxu3 }
 0x42a   : > { %970 = vxpose.xlu0.b32.cont [2/4] (short) (narrow) %v927_v32, 8  ;;  %v967_v33 = vpop.f32.mrf.mxu2 }
 0x42b   : > { %v948_v34 = vpop.f32.mrf.mxu1 }
 0x431   : > { %v929_v35 = vpop.f32.mrf.mxu3 }
 0x432   : > { %971 = vxpose.xlu0.b32.cont [3/4] (short) (narrow) %v946_v31, 8 }
 0x43a   : > { %972 = vxpose.xlu0.b32.end [4/4] (short) (narrow) %v965_v18, 8 }
 0x4c6   : > { %v985_v36 = vpop.trf.xlu0 }
 0x4c7   : > { %v1001_v37 = vpack.c.bf16 %v985_v36, %v985_v36 }
 0x4c9   : > { %1336 = vmatmul.msk.bf16.vlgmr.msrb.gmra.mxu3 %vm567_vm0, %v1001_v37 }
 0x54c   : > { %v1033_v41 = vpop.f32.mrf.mxu3 }
 0x54d   : > { %v1034_v42 = vadd.f32 %v1033_v41, %v1008_v40 }
 0x54f   : > { %v1037_v43 = vadd.f32 %v1034_v42, %v1669_v2 }
 0x551   : > { %v1038_v44 = vsel %vm567_vm0, %v1037_v43, 0.0  ;;  %v1057_v45 = vmul.f32 %v1037_v43, %v1037_v43 }
 0x552   : > { %1039 = vadd.xlane.f32.xlu1 %v1038_v44 }
 0x553   : > { %v1058_v46 = vsel %vm567_vm0, %v1057_v45, 0.0 }
 0x554   : > { %v1035_v47 = vpop.f32.mrf.mxu3  ;;  %1059 = vadd.xlane.f32.xlu2 %v1058_v46 }
 0x5c5   : > { %v1040_v52 = vpop.xlane.xlu1 %1039 }
 0x5c6   : > { %v1041_v53 = vrot.slane %v1040_v52, 4 }
 0x5c7   : > { %v1060_v54 = vpop.xlane.xlu2 %1059 }
 0x5c8   : > { %v1042_v55 = vadd.f32 %v1041_v53, %v1040_v52  ;;  %v1061_v56 = vrot.slane %v1060_v54, 4 }
 0x5ca   : > { %v1043_v2 = vrot.slane %v1042_v55, 2  ;;  %v1062_v58 = vadd.f32 %v1061_v56, %v1060_v54 }
 0x5cc   : > { %v1063_v59 = vrot.slane %v1062_v58, 2  ;;  %v1044_v60 = vadd.f32 %v1043_v2, %v1042_v55 }
 0x5ce   : > { %v1045_v62 = vrot.slane %v1044_v60, 1  ;;  %v1064_v63 = vadd.f32 %v1063_v59, %v1062_v58 }
 0x5d0   : > { %v1046_v0 = vadd.f32 %v1045_v62, %v1044_v60  ;;  %v1065_v3 = vrot.slane %v1064_v63, 1 }
 0x5d2   : > { %1393 = vpush %v1046_v0  ;;  %v1066_v4 = vadd.f32 %v1065_v3, %v1064_v63 }
 0x5d3   : > { %1395 = vpush %v1054_v1 }
 0x5d4   : > { %1397 = vpush %v1066_v4 }
 0x603   : > { %s1394_s12 = spop %1393 }
 0x604   : > { %s1770_s13 = spop %1395 }
 0x605   : > { %s1056_s30 = smul.f32 %s1770_s13, %s1394_s12  ;;  %s1398_s14 = spop %1397 }
 0x606   : > { %s1076_s26 = smul.f32 %s1398_s14, %s1770_s13 }
 0x607   : > { %s1077_s15 = smul.f32 %s1056_s30, %s1056_s30  ;;  %v1079_v19 = vstv %s1056_s30 }
 0x608   : > { %v1080_v22 = vsub.f32 %v1037_v43, %v1079_v19 }
 0x609   : > { %s1078_s16 = ssub.f32 %s1076_s26, %s1077_s15 }
 0x60b   : > { %s1081_s22 = sadd.f32 1e-05, %s1078_s16 }
 0x60d   : > { %v1082_v6 = vstv %s1081_s22 }
 0x60e   : > { %1480 = vrsqrt.f32 %v1082_v6  ;;  %vm1089_vm5 = vweird.f32 %v1082_v6 }
 0x614   : > { %v1481_v7 = vpop.eup %1480 }
 0x615   : > { %v1084_v8 = vmul.f32 %v1481_v7, %v1082_v6  ;;  %vm1090_vm4 = vweird.f32 %v1481_v7 }
 0x616   : > { %vm1091_vm6 = vmor %vm1089_vm5, %vm1090_vm4 }
 0x617   : > { %v1085_v9 = vmul.f32 %v1481_v7, %v1084_v8 }
 0x619   : > { %v1086_v10 = vmul.f32 0.5, %v1085_v9 }
 0x61b   : > { %v1087_v11 = vsub.f32 1.5, %v1086_v10 }
 0x61d   : > { %v1088_v12 = vmul.f32 %v1481_v7, %v1087_v11 }
 0x61f   : > { %v1092_v14 = vsel %vm1091_vm6, %v1481_v7, %v1088_v12 }
 0x620   : > { %1399 = vpush %v1092_v14 }
 0x651   : > { %s1400_s15 = spop %1399 }
 0x652   : > { %v1094_v23 = vstv %s1400_s15  ;;  %s388_s15 = sand.u32 1, %s1538_s18  }
 0x653   : > { %v1095_v25 = vmul.f32 %v1094_v23, %v1080_v22  ;;  %s1287_s30 = sshll.u32 %s388_s15, 3 }
 0x655   : > { %v1096_v26 = vmul.f32 %v1095_v25, %v404_v21 }
 0x657   : > { %v1097_v27 = vadd.f32 %v1096_v26, %v406_v24 }
 0x659   : > { %v1098_v28 = vpack.c.bf16 %v1097_v27, %v1097_v27 }
 0x65b   : > { %1345 = vmatmul.msk.bf16.vlgmr.msrb.gmra.mxu1 %vm567_vm0, %v1098_v28 }
 0x6d8   : > { %v1130_v13 = vpop.f32.mrf.mxu1 }
 0x6d9   : > { %v1131_v18 = vadd.f32 %v1130_v13, %v1105_v30 }
 0x6db   : > { %v1134_v31 = vadd.f32 %v1131_v18, %v1097_v27 }
 0x6dd   : > { %v1135_v32 = vsel %vm567_vm0, %v1134_v31, 0.0  ;;  %v1154_v33 = vmul.f32 %v1134_v31, %v1134_v31 }
 0x6de   : > { %1136 = vadd.xlane.f32.xlu1 %v1135_v32 }
 0x6df   : > { %v1155_v34 = vsel %vm567_vm0, %v1154_v33, 0.0 }
 0x6e0   : > { %v1132_v35 = vpop.f32.mrf.mxu1  ;;  %1156 = vadd.xlane.f32.xlu2 %v1155_v34 }
 0x751   : > { %v1137_v36 = vpop.xlane.xlu1 %1136 }
 0x752   : > { %v1138_v37 = vrot.slane %v1137_v36, 4 }
 0x753   : > { %v1157_v38 = vpop.xlane.xlu2 %1156 }
 0x754   : > { %v1139_v39 = vadd.f32 %v1138_v37, %v1137_v36  ;;  %v1158_v40 = vrot.slane %v1157_v38, 4 }
 0x756   : > { %v1140_v41 = vrot.slane %v1139_v39, 2  ;;  %v1159_v42 = vadd.f32 %v1158_v40, %v1157_v38 }
 0x758   : > { %v1141_v43 = vadd.f32 %v1140_v41, %v1139_v39  ;;  %v1160_v44 = vrot.slane %v1159_v42, 2 }
 0x75a   : > { %v1161_v45 = vadd.f32 %v1160_v44, %v1159_v42  ;;  %v1142_v46 = vrot.slane %v1141_v43, 1 }
 0x75c   : > { %v1143_v47 = vadd.f32 %v1142_v46, %v1141_v43  ;;  %v1162_v48 = vrot.slane %v1161_v45, 1 }
 0x75e   : > { %1401 = vpush %v1143_v47  ;;  %v1163_v49 = vadd.f32 %v1162_v48, %v1161_v45 }
 0x760   : > { %1403 = vpush %v1163_v49 }
 0x78f   : > { %s1402_s22 = spop %1401 }
 0x790   : > { %s1153_s24 = smul.f32 %s1402_s22, %s1770_s13  ;;  %s1504_s22 = scalar_lea.hbm %s1849_s11, 16 }
 0x791   : > { %s1404_s25 = spop %1403 }
 0x792   : > { %s1174_s29 = smul.f32 %s1153_s24, %s1153_s24  ;;  %v1176_v2 = vstv %s1153_s24 }
 0x793   : > { %s1173_s12 = smul.f32 %s1404_s25, %s1770_s13  ;;  %s1347_s13 = sshll.u32 %s1631_s21, 3  ;;  %v1177_v58 = vsub.f32 %v1134_v31, %v1176_v2 }
 0x794   : > { %s1197_s21 = scalar_lea.sflag [#allocation3], %s388_s15 }
 0x795   : > { %s1175_s14 = ssub.f32 %s1173_s12, %s1174_s29  ;;  %s1207_s29 = scalar_lea.hbm %s1849_s11, %s1347_s13 }
 0x796   : > { %s390_s12 = scalar_lea.vmem [#allocation2], %s1287_s30 }
 0x797   : > { %s1178_s26 = sadd.f32 1e-05, %s1175_s14  ;;  %s1209_s14 = sshll.u32 %s390_s12, 4  ;;  %s1210_s14 = int_to_ptr.vmem [resolvable:$true] %s1209_s14 }
 0x799   : > { %v1179_v50 = vstv %s1178_s26  ;;  %s1211_s26 = sshll.u32 %s1207_s29, 4  ;;  %s1212_s26 = int_to_ptr.hbm [resolvable:$true] %s1211_s26 }
 0x79a   : > { %1482 = vrsqrt.f32 %v1179_v50  ;;  %vm1186_vm8 = vweird.f32 %v1179_v50  ;;  %s1498_s24 = sshra.s32 %s1212_s26, 4  ;;  %s1499_s24 = int_to_ptr.hbm [resolvable:$true] %s1498_s24 }
 0x79b   : > { %s1500_s13 = scalar_lea.hbm %s1499_s24, 8  ;;  %p1505_p0 = scmp.lt.s32.totalorder %s1499_s24, %s1849_s11 }
 0x79c   : > { %p1501_p11 = scmp.ne.s32.totalorder %s1499_s24, %s1500_s13  ;;  %p1506_p1 = scmp.lt.s32.totalorder %s1504_s22, %s1500_s13 }
 0x79e   : > { %p1502_p12 = pnand %p1501_p11, %p1648_p5  ;;  %p1507_p2 = por %p1506_p1, %p1505_p0 }
 0x7a0   : > { %v1483_v51 = vpop.eup %1482  ;;  %p1503_p13 = pneg %p1502_p12 }
 0x7a1   : > { %v1181_v52 = vmul.f32 %v1483_v51, %v1179_v50  ;;  %vm1187_vm7 = vweird.f32 %v1483_v51 }
 0x7a2   : > { %vm1188_vm9 = vmor %vm1186_vm8, %vm1187_vm7  ;;  %p1508_p3 = pnand %p1507_p2, %p1503_p13 }
 0x7a3   : > { %v1182_v53 = vmul.f32 %v1483_v51, %v1181_v52 }
 0x7a5   : > { %v1183_v54 = vmul.f32 0.5, %v1182_v53 }
 0x7a7   : > { %v1184_v55 = vsub.f32 1.5, %v1183_v54 }
 0x7a9   : > { %v1185_v56 = vmul.f32 %v1483_v51, %v1184_v55 }
 0x7ab   : > { %v1189_v57 = vsel %vm1188_vm9, %v1483_v51, %v1185_v56 }
 0x7ac   : > { %1405 = vpush %v1189_v57 }
 0x7dd   : > { %s1406_s16 = spop %1405 }
 0x7de   : > { %v1191_v59 = vstv %s1406_s16 }
 0x7df   : > { %v1192_v60 = vmul.f32 %v1191_v59, %v1177_v58 }
 0x7e1   : > { %v1193_v61 = vmul.f32 %v1192_v60, %v404_v21 }
 0x7e3   : > { %v1194_v62 = vadd.f32 %v1193_v61, %v406_v24 }
 0x7e5   : > { %1195 = vst.msk [vmem:[%s390_s12] sm:$0xff] %vm567_vm0, %v1194_v62 }
 0x7e6   : > { %1511 = shalt.err (!%p1508_p3)
}
 0x7e7   : > { %1407 = dma.vmem_to_hbm [thread:$0]  (%p1648_p5), %s1210_s14, 128, %s1212_s26, %s1197_s21  }
 0x7e8 PF: > { %p1413_p4 = scmp.ge.s32.totalorder %s1546_s20, 2  ;;  %s1223_s15 = sand.u32 1, %s1534_s17  }
 0x7e9   : > { %s1224_s12 = scalar_lea.sflag [#allocation3], %s1223_s15 }
 0x7ea   : > { %p1410_p7 = pnand %p1413_p4, %p1652_p6 }
 0x7ec   : > { %p1411_p8 = pneg %p1410_p7 }
 0x7ee   : > { %1529 = dma.done.wait (%p1411_p8), %s1224_s12, 128  }
 0x7ef   : > { %1531 = vsyncadd (%p1411_p8), %s1224_s12, 4294967168  ;;  %s1853_s24 = sld [smem:[#allocation5_spill]]  ;;  %p21_p9 = scmp.ge.s32.totalorder %s1635_s23, 4  }
 0x7f0   : > { %s1854_s17 = smov %s1538_s18  ;;  %s1855_s18 = smov %s1542_s19 }
 0x7f1   : > { %s1857_s20 = smov %s1635_s23  ;;  %23 = sbr.rel (!%p21_p9) target bundleno = 3 (0x3), region = 102 }
 0x7f5   : > { %s1856_s19 = smov %s1853_s24 }
 0x7f6   :  { %1230 = vsyncpa [#allocation3], 1 }
 0x7f7   :  { %1232 = vsyncpa [#allocation3 + $0x1], 1 }

</bundles_post_ra>
